<compile_context>
chip_gen: v5e
topology: v5e:2x2
jax: 0.10.0
libtpu: 0.0.40
codegen_flags: <defaults>
</compile_context>

<pallas_src>
import functools

import jax
import jax.numpy as jnp
from jax import lax
from jax.experimental import pallas as pl
from jax.experimental.pallas import tpu as pltpu


def _round_up(x, m):
    return ((x + m - 1) // m) * m


# --------------------------------------------------------------------------- #
# Pallas kernels
# --------------------------------------------------------------------------- #
def _fused_conv_kernel(x_ref, w1_ref, s1_ref, r1_ref, w2_ref, s2_ref, r2_ref,
                       o_ref):
    # x_ref : (G, Hin+2, Win*Cin) bf16 -- channel-minor images, one zero row of
    #         conv1 padding top/bottom (width padding lives in the bands).
    # w*_ref: (KH, Win*Cin, Wo*Cout) bf16 -- banded conv weights per row tap.
    # s*_ref: (2, Wo*C, P*C)        bf16 -- width-pool selections (dw = 0, 1).
    # r*_ref: (2, rows, Ho)         bf16 -- height-pool selections (dh = 0, 1);
    #         stage-1's has 2 extra all-zero rows = conv2 row padding.
    # o_ref : (G, P2, P2*C2)        bf16 -- pooled stage-2 activations.
    f32 = jnp.float32
    kh = w1_ref.shape[0]
    ho1 = x_ref.shape[1] - kh + 1
    ho2 = r1_ref.shape[1] - kh + 1

    # Widen the resident weight slabs once per grid step (hoisted out of the
    # per-image loop); per-image activations stay f32 inside the kernel.
    w1 = [w1_ref[i].astype(f32) for i in range(kh)]
    w2 = [w2_ref[i].astype(f32) for i in range(kh)]
    s1 = [s1_ref[d].astype(f32) for d in range(2)]
    r1 = [r1_ref[d].astype(f32) for d in range(2)]
    s2 = [s2_ref[d].astype(f32) for d in range(2)]
    r2 = [r2_ref[d].astype(f32) for d in range(2)]

    def conv_relu(x, w, ho):
        y = jnp.dot(x[0:ho, :], w[0], preferred_element_type=f32)
        for i in range(1, kh):
            y = y + jnp.dot(x[i:i + ho, :], w[i], preferred_element_type=f32)
        return jnp.maximum(y, 0.0)

    def pool(y, s, r):
        # 2x2 / stride-2 / pad-1 max pool via 0/1 selection matmuls + max.
        # Zero selection rows/cols emulate the -inf padding; this is only
        # correct because y is post-ReLU (>= 0).  Do not reorder ReLU/pool.
        zw = jnp.maximum(jnp.dot(y, s[0], preferred_element_type=f32),
                         jnp.dot(y, s[1], preferred_element_type=f32))
        return jnp.maximum(jnp.dot(r[0], zw, preferred_element_type=f32),
                           jnp.dot(r[1], zw, preferred_element_type=f32))

    for g in range(x_ref.shape[0]):                 # static unroll over images
        xg = x_ref[g].astype(f32)                   # aligned full-tile load
        z1 = pool(conv_relu(xg, w1, ho1), s1, r1)   # (ho2+kh-1, P1*C1) row-padded
        z2 = pool(conv_relu(z1, w2, ho2), s2, r2)   # (P2, P2*C2)
        o_ref[g] = z2.astype(o_ref.dtype)


def _mlp_kernel(x_ref, w1_ref, w2_ref, o_ref):
    # out = relu(x @ W1) @ W2   (both Linear layers are bias-free)
    h = jnp.dot(x_ref[...], w1_ref[...], preferred_element_type=jnp.float32)
    h = jnp.maximum(h, 0.0).astype(jnp.bfloat16)
    o_ref[...] = jnp.dot(h, w2_ref[...], preferred_element_type=jnp.float32)


# --------------------------------------------------------------------------- #
# One-time parameter packing (off the per-forward hot path)
# --------------------------------------------------------------------------- #
def _band_conv_weights(w_oihw, win, pad=1):
    # PyTorch Conv2d weight (O, I, KH, KW), stride 1.  Returns
    # (KH, win*I, wo*O) with band[t, wi*I+c, w*O+o] = w[o, c, t, wi-w+pad]
    # when 0 <= wi-w+pad < KW else 0 (zero width padding folded in).
    o, i, kh, kw = w_oihw.shape
    wo = win + 2 * pad - kw + 1
    wt = jnp.transpose(w_oihw.astype(jnp.float32), (2, 3, 1, 0))  # (kh,kw,I,O)
    wi_idx = jnp.arange(win)[:, None]
    w_idx = jnp.arange(wo)[None, :]
    shift = wi_idx - w_idx + pad                                  # (win, wo)
    valid = (shift >= 0) & (shift < kw)
    band = wt[:, jnp.clip(shift, 0, kw - 1)]                      # (kh,win,wo,I,O)
    band = band * valid[None, :, :, None, None].astype(jnp.float32)
    band = jnp.transpose(band, (0, 1, 3, 2, 4)).reshape(kh, win * i, wo * o)
    return band, wo


def _pool_w_mats(win, c):
    # Width max-pool 2x2/s2/pad1 on channel-minor (w*C + c) columns.
    p = win // 2 + 1
    wi = jnp.arange(win)[:, None]
    wp = jnp.arange(p)[None, :]
    eye_c = jnp.eye(c, dtype=jnp.float32)
    mats = [jnp.kron((wi == 2 * wp - 1 + dw).astype(jnp.float32), eye_c)
            for dw in (0, 1)]
    return jnp.stack(mats), p                       # (2, win*c, p*c)


def _pool_h_mats(hin, out_pad):
    # Height max-pool 2x2/s2/pad1; out_pad extra all-zero rows on each side
    # double as the next conv's spatial row padding.
    p = hin // 2 + 1
    rows = p + 2 * out_pad
    r = jnp.arange(rows)[:, None]
    hi = jnp.arange(hin)[None, :]
    hp = r - out_pad
    mats = [((hp >= 0) & (hp < p) & (hi == 2 * hp - 1 + dh)).astype(jnp.float32)
            for dh in (0, 1)]
    return jnp.stack(mats), p                       # (2, rows, hin)


def pack_cnn2_params(params, height=32, width=32):
    conv1 = jnp.asarray(params["conv1"], jnp.float32)
    conv2 = jnp.asarray(params["conv2"], jnp.float32)
    fc1 = jnp.asarray(params["fc1"], jnp.float32)
    fc2 = jnp.asarray(params["fc2"], jnp.float32)
    c1, kh = conv1.shape[0], conv1.shape[2]
    c2 = conv2.shape[0]

    # stage 1: conv1 + pool1 (row-pool also emits conv2's row padding)
    w1b, wo1 = _band_conv_weights(conv1, width)
    ho1 = height + 2 - kh + 1
    s1, p1w = _pool_w_mats(wo1, c1)
    r1, p1h = _pool_h_mats(ho1, out_pad=1)

    # stage 2: conv2 + pool2
    w2b, wo2 = _band_conv_weights(conv2, p1w)
    ho2 = p1h + 2 - kh + 1
    s2, p2w = _pool_w_mats(wo2, c2)
    r2, p2h = _pool_h_mats(ho2, out_pad=0)

    # MLP: fold the PyTorch NCHW flatten (c*P*P + h*P + w) into fc1's rows so
    # the kernel consumes our (h, w, c) channel-minor flatten directly.
    nh = fc1.shape[0]
    assert fc1.shape[1] == c2 * p2h * p2w, (fc1.shape, c2, p2h, p2w)
    w1m = jnp.transpose(fc1.reshape(nh, c2, p2h, p2w),
                        (2, 3, 1, 0)).reshape(p2h * p2w * c2, nh)
    w2m = fc2.T

    bf = jnp.bfloat16
    return {"w1b": w1b.astype(bf), "s1": s1.astype(bf), "r1": r1.astype(bf),
            "w2b": w2b.astype(bf), "s2": s2.astype(bf), "r2": r2.astype(bf),
            "w1m": w1m.astype(bf), "w2m": w2m.astype(bf)}


# --------------------------------------------------------------------------- #
# Forward pass
# --------------------------------------------------------------------------- #
@functools.partial(jax.jit, static_argnames=("images_per_step",))
def cnn2_forward(x_nchw, packed, images_per_step=8):
    b, cin, h, w = x_nchw.shape
    p2h = packed["r2"].shape[1]
    n2 = packed["s2"].shape[2]                       # P2 * C2
    nh = packed["w1m"].shape[1]
    nc = packed["w2m"].shape[1]

    # Channel-minor (H, W*C) layout + one zero row of conv1 padding per side;
    # only data movement on the tiny raw input stays in XLA glue.
    x = jnp.transpose(x_nchw.astype(jnp.float32), (0, 2, 3, 1)).reshape(b, h, w * cin)
    x = jnp.pad(x, ((0, 0), (1, 1), (0, 0))).astype(jnp.bfloat16)

    g = max(1, min(images_per_step, b))
    bp = _round_up(b, g)
    if bp != b:
        x = jnp.pad(x, ((0, bp - b), (0, 0), (0, 0)))

    # ---- fused conv1 + ReLU + pool1 + conv2 + ReLU + pool2 ----
    conv_out = pl.pallas_call(
        _fused_conv_kernel,
        out_shape=jax.ShapeDtypeStruct((bp, p2h, n2), jnp.bfloat16),
        grid=(bp // g,),
        in_specs=[
            pl.BlockSpec((g,) + x.shape[1:], lambda i: (i, 0, 0)),
            pl.BlockSpec(packed["w1b"].shape, lambda i: (0, 0, 0)),
            pl.BlockSpec(packed["s1"].shape, lambda i: (0, 0, 0)),
            pl.BlockSpec(packed["r1"].shape, lambda i: (0, 0, 0)),
            pl.BlockSpec(packed["w2b"].shape, lambda i: (0, 0, 0)),
            pl.BlockSpec(packed["s2"].shape, lambda i: (0, 0, 0)),
            pl.BlockSpec(packed["r2"].shape, lambda i: (0, 0, 0)),
        ],
        out_specs=pl.BlockSpec((g, p2h, n2), lambda i: (i, 0, 0)),
        compiler_params=pltpu.CompilerParams(dimension_semantics=("parallel",)),
    )(x, packed["w1b"], packed["s1"], packed["r1"],
      packed["w2b"], packed["s2"], packed["r2"])

    # ---- fc1 + ReLU + fc2, M-tiled over batch ----
    feat = p2h * n2
    flat = conv_out.reshape(bp, feat)                # contiguous reshape
    tm = min(128, _round_up(b, 8))
    bp2 = _round_up(b, tm)
    if bp2 > bp:
        flat = jnp.pad(flat, ((0, bp2 - bp), (0, 0)))
    else:
        flat = flat[:bp2]

    out = pl.pallas_call(
        _mlp_kernel,
        out_shape=jax.ShapeDtypeStruct((bp2, nc), jnp.float32),
        grid=(bp2 // tm,),
        in_specs=[pl.BlockSpec((tm, feat), lambda i: (i, 0)),
                  pl.BlockSpec((feat, nh), lambda i: (0, 0)),
                  pl.BlockSpec((nh, nc), lambda i: (0, 0))],
        out_specs=pl.BlockSpec((tm, nc), lambda i: (i, 0)),
        compiler_params=pltpu.CompilerParams(dimension_semantics=("parallel",)),
    )(flat, packed["w1m"], packed["w2m"])
    return out[:b]


# --------------------------------------------------------------------------- #
# Pure-JAX reference (for the correctness check only)
# --------------------------------------------------------------------------- #
def cnn2_reference(x_nchw, params):
    hi = lax.Precision.HIGHEST
    dn = ("NHWC", "HWIO", "NHWC")
    x = jnp.transpose(x_nchw, (0, 2, 3, 1))
    w1 = jnp.transpose(params["conv1"], (2, 3, 1, 0))
    w2 = jnp.transpose(params["conv2"], (2, 3, 1, 0))
    pool = lambda y: lax.reduce_window(
        y, -jnp.inf, lax.max, (1, 2, 2, 1), (1, 2, 2, 1),
        ((0, 0), (1, 1), (1, 1), (0, 0)))
    y = lax.conv_general_dilated(x, w1, (1, 1), ((1, 1), (1, 1)),
                                 dimension_numbers=dn, precision=hi)
    y = pool(jnp.maximum(y, 0.0))
    y = lax.conv_general_dilated(y, w2, (1, 1), ((1, 1), (1, 1)),
                                 dimension_numbers=dn, precision=hi)
    y = pool(jnp.maximum(y, 0.0))
    flat = jnp.transpose(y, (0, 3, 1, 2)).reshape(x.shape[0], -1)
    h = jnp.maximum(jnp.dot(flat, params["fc1"].T, precision=hi), 0.0)
    return jnp.dot(h, params["fc2"].T, precision=hi)


# --------------------------------------------------------------------------- #
if __name__ == "__main__":
    batch, in_ch, hidden, num_hiddens, num_classes = 2, 3, 4, 32, 10

    key = jax.random.PRNGKey(0)
    k1, k2, k3, k4, kx = jax.random.split(key, 5)
    params = {
        "conv1": 0.05 * jax.random.normal(k1, (hidden, in_ch, 5, 5), jnp.float32),
        "conv2": 0.05 * jax.random.normal(k2, (2 * hidden, hidden, 5, 5), jnp.float32),
        "fc1": 0.05 * jax.random.normal(k3, (num_hiddens, 2 * hidden * 8 * 8), jnp.float32),
        "fc2": 0.05 * jax.random.normal(k4, (num_classes, num_hiddens), jnp.float32),
    }
    # fc1 in_features = 2*hidden*(8*8) implies a 32x32 spatial input.
    x = jax.random.normal(kx, (batch, in_ch, 32, 32), jnp.float32)

    packed = pack_cnn2_params(params, height=32, width=32)   # one-time repack
    out = jax.block_until_ready(cnn2_forward(x, packed))
    assert out.shape == (batch, num_classes), out.shape

    ref = jax.block_until_ready(cnn2_reference(x, params))
    max_err = float(jnp.max(jnp.abs(out - ref)))
    # bf16 operands / default MXU precision vs an f32 HIGHEST-precision
    # reference, so compare with a correspondingly relaxed tolerance.
    assert jnp.allclose(out, ref, rtol=1e-2, atol=1e-2), max_err

    print("KERNEL_OK")
</pallas_src>

<mosaic_0001>
module attributes {stable_mosaic.version = 11 : i64} {
  func.func @_mlp_kernel(%arg0: i32, %arg1: memref<8x512xbf16, #tpu.memory_space<vmem>>, %arg2: memref<512x32xbf16, #tpu.memory_space<vmem>>, %arg3: memref<32x10xbf16, #tpu.memory_space<vmem>>, %arg4: memref<8x10xf32, #tpu.memory_space<vmem>>) attributes {dimension_semantics = [#tpu.dimension_semantics<parallel>], iteration_bounds = array<i64: 1>, scalar_prefetch = 0 : i64, scratch_operands = 0 : i64, tpu.core_type = #tpu.core_type<tc>, window_params = [{transform_indices = @transform_0, window_bounds = array<i64: 8, 512>}, {pipeline_mode = #tpu.pipeline_mode<synchronous>, transform_indices = @transform_1, window_bounds = array<i64: 512, 32>}, {pipeline_mode = #tpu.pipeline_mode<synchronous>, transform_indices = @transform_2, window_bounds = array<i64: 32, 10>}, {transform_indices = @transform_3, window_bounds = array<i64: 8, 10>}]} {
    %c0 = arith.constant 0 : index
    %c0_0 = arith.constant 0 : index
    %0 = vector.load %arg1[%c0, %c0_0] : memref<8x512xbf16, #tpu.memory_space<vmem>>, vector<8x512xbf16>
    %c0_1 = arith.constant 0 : index
    %c0_2 = arith.constant 0 : index
    %1 = vector.load %arg2[%c0_1, %c0_2] : memref<512x32xbf16, #tpu.memory_space<vmem>>, vector<512x32xbf16>
    %cst = arith.constant dense<0.000000e+00> : vector<8x32xf32>
    %2 = tpu.matmul %0, %1, %cst {dimension_numbers = #tpu.dot_dimension_numbers<[1], [0], [0], [1], [0, 0, 1, 1], [], []>} : vector<8x512xbf16>, vector<512x32xbf16>, vector<8x32xf32> -> vector<8x32xf32>
    %cst_3 = arith.constant 0.000000e+00 : f32
    %3 = vector.broadcast %cst_3 : f32 to vector<8x32xf32>
    %4 = arith.maximumf %2, %3 : vector<8x32xf32>
    %5 = arith.truncf %4 : vector<8x32xf32> to vector<8x32xbf16>
    %c0_4 = arith.constant 0 : index
    %c0_5 = arith.constant 0 : index
    %6 = vector.load %arg3[%c0_4, %c0_5] : memref<32x10xbf16, #tpu.memory_space<vmem>>, vector<32x10xbf16>
    %cst_6 = arith.constant dense<0.000000e+00> : vector<8x10xf32>
    %7 = tpu.matmul %5, %6, %cst_6 {dimension_numbers = #tpu.dot_dimension_numbers<[1], [0], [0], [1], [0, 0, 1, 1], [], []>} : vector<8x32xbf16>, vector<32x10xbf16>, vector<8x10xf32> -> vector<8x10xf32>
    %c0_7 = arith.constant 0 : index
    %c0_8 = arith.constant 0 : index
    %8 = vector.load %arg4[%c0_7, %c0_8] : memref<8x10xf32, #tpu.memory_space<vmem>>, vector<8x10xf32>
    tpu.vector_store %arg4[%c0_7, %c0_8], %7 {strides = array<i32>} : memref<8x10xf32, #tpu.memory_space<vmem>>, vector<8x10xf32>,
    return
  }
  func.func @transform_0(%arg0: i32) -> (i32, i32) {
    %c0_i32 = arith.constant 0 : i32
    %c0_i32_0 = arith.constant 0 : i32
    return %arg0, %c0_i32 : i32, i32
  }
  func.func @transform_1(%arg0: i32) -> (i32, i32) {
    %c0_i32 = arith.constant 0 : i32
    %c0_i32_0 = arith.constant 0 : i32
    %c0_i32_1 = arith.constant 0 : i32
    return %c0_i32, %c0_i32_0 : i32, i32
  }
  func.func @transform_2(%arg0: i32) -> (i32, i32) {
    %c0_i32 = arith.constant 0 : i32
    %c0_i32_0 = arith.constant 0 : i32
    %c0_i32_1 = arith.constant 0 : i32
    return %c0_i32, %c0_i32_0 : i32, i32
  }
  func.func @transform_3(%arg0: i32) -> (i32, i32) {
    %c0_i32 = arith.constant 0 : i32
    %c0_i32_0 = arith.constant 0 : i32
    return %arg0, %c0_i32 : i32, i32
  }
}

module attributes {stable_mosaic.version = 11 : i64} {
  func.func @_fused_conv_kernel(%arg0: i32, %arg1: memref<2x34x96xbf16, #tpu.memory_space<vmem>>, %arg2: memref<5x96x120xbf16, #tpu.memory_space<vmem>>, %arg3: memref<2x120x64xbf16, #tpu.memory_space<vmem>>, %arg4: memref<2x18x30xbf16, #tpu.memory_space<vmem>>, %arg5: memref<5x64x112xbf16, #tpu.memory_space<vmem>>, %arg6: memref<2x112x64xbf16, #tpu.memory_space<vmem>>, %arg7: memref<2x8x14xbf16, #tpu.memory_space<vmem>>, %arg8: memref<2x8x64xbf16, #tpu.memory_space<vmem>>) attributes {dimension_semantics = [#tpu.dimension_semantics<parallel>], iteration_bounds = array<i64: 1>, scalar_prefetch = 0 : i64, scratch_operands = 0 : i64, tpu.core_type = #tpu.core_type<tc>, window_params = [{transform_indices = @transform_0, window_bounds = array<i64: 2, 34, 96>}, {pipeline_mode = #tpu.pipeline_mode<synchronous>, transform_indices = @transform_1, window_bounds = array<i64: 5, 96, 120>}, {pipeline_mode = #tpu.pipeline_mode<synchronous>, transform_indices = @transform_2, window_bounds = array<i64: 2, 120, 64>}, {pipeline_mode = #tpu.pipeline_mode<synchronous>, transform_indices = @transform_3, window_bounds = array<i64: 2, 18, 30>}, {pipeline_mode = #tpu.pipeline_mode<synchronous>, transform_indices = @transform_4, window_bounds = array<i64: 5, 64, 112>}, {pipeline_mode = #tpu.pipeline_mode<synchronous>, transform_indices = @transform_5, window_bounds = array<i64: 2, 112, 64>}, {pipeline_mode = #tpu.pipeline_mode<synchronous>, transform_indices = @transform_6, window_bounds = array<i64: 2, 8, 14>}, {transform_indices = @transform_7, window_bounds = array<i64: 2, 8, 64>}]} {
    %c0 = arith.constant 0 : index
    %c0_0 = arith.constant 0 : index
    %c0_1 = arith.constant 0 : index
    %0 = vector.load %arg2[%c0, %c0_0, %c0_1] : memref<5x96x120xbf16, #tpu.memory_space<vmem>>, vector<1x96x120xbf16>
    %1 = vector.shape_cast %0 : vector<1x96x120xbf16> to vector<96x120xbf16>
    %2 = arith.extf %1 : vector<96x120xbf16> to vector<96x120xf32>
    %c1 = arith.constant 1 : index
    %c0_2 = arith.constant 0 : index
    %c0_3 = arith.constant 0 : index
    %3 = vector.load %arg2[%c1, %c0_2, %c0_3] : memref<5x96x120xbf16, #tpu.memory_space<vmem>>, vector<1x96x120xbf16>
    %4 = vector.shape_cast %3 : vector<1x96x120xbf16> to vector<96x120xbf16>
    %5 = arith.extf %4 : vector<96x120xbf16> to vector<96x120xf32>
    %c2 = arith.constant 2 : index
    %c0_4 = arith.constant 0 : index
    %c0_5 = arith.constant 0 : index
    %6 = vector.load %arg2[%c2, %c0_4, %c0_5] : memref<5x96x120xbf16, #tpu.memory_space<vmem>>, vector<1x96x120xbf16>
    %7 = vector.shape_cast %6 : vector<1x96x120xbf16> to vector<96x120xbf16>
    %8 = arith.extf %7 : vector<96x120xbf16> to vector<96x120xf32>
    %c3 = arith.constant 3 : index
    %c0_6 = arith.constant 0 : index
    %c0_7 = arith.constant 0 : index
    %9 = vector.load %arg2[%c3, %c0_6, %c0_7] : memref<5x96x120xbf16, #tpu.memory_space<vmem>>, vector<1x96x120xbf16>
    %10 = vector.shape_cast %9 : vector<1x96x120xbf16> to vector<96x120xbf16>
    %11 = arith.extf %10 : vector<96x120xbf16> to vector<96x120xf32>
    %c4 = arith.constant 4 : index
    %c0_8 = arith.constant 0 : index
    %c0_9 = arith.constant 0 : index
    %12 = vector.load %arg2[%c4, %c0_8, %c0_9] : memref<5x96x120xbf16, #tpu.memory_space<vmem>>, vector<1x96x120xbf16>
    %13 = vector.shape_cast %12 : vector<1x96x120xbf16> to vector<96x120xbf16>
    %14 = arith.extf %13 : vector<96x120xbf16> to vector<96x120xf32>
    %c0_10 = arith.constant 0 : index
    %c0_11 = arith.constant 0 : index
    %c0_12 = arith.constant 0 : index
    %15 = vector.load %arg5[%c0_10, %c0_11, %c0_12] : memref<5x64x112xbf16, #tpu.memory_space<vmem>>, vector<1x64x112xbf16>
    %16 = vector.shape_cast %15 : vector<1x64x112xbf16> to vector<64x112xbf16>
    %17 = arith.extf %16 : vector<64x112xbf16> to vector<64x112xf32>
    %c1_13 = arith.constant 1 : index
    %c0_14 = arith.constant 0 : index
    %c0_15 = arith.constant 0 : index
    %18 = vector.load %arg5[%c1_13, %c0_14, %c0_15] : memref<5x64x112xbf16, #tpu.memory_space<vmem>>, vector<1x64x112xbf16>
    %19 = vector.shape_cast %18 : vector<1x64x112xbf16> to vector<64x112xbf16>
    %20 = arith.extf %19 : vector<64x112xbf16> to vector<64x112xf32>
    %c2_16 = arith.constant 2 : index
    %c0_17 = arith.constant 0 : index
    %c0_18 = arith.constant 0 : index
    %21 = vector.load %arg5[%c2_16, %c0_17, %c0_18] : memref<5x64x112xbf16, #tpu.memory_space<vmem>>, vector<1x64x112xbf16>
    %22 = vector.shape_cast %21 : vector<1x64x112xbf16> to vector<64x112xbf16>
    %23 = arith.extf %22 : vector<64x112xbf16> to vector<64x112xf32>
    %c3_19 = arith.constant 3 : index
    %c0_20 = arith.constant 0 : index
    %c0_21 = arith.constant 0 : index
    %24 = vector.load %arg5[%c3_19, %c0_20, %c0_21] : memref<5x64x112xbf16, #tpu.memory_space<vmem>>, vector<1x64x112xbf16>
    %25 = vector.shape_cast %24 : vector<1x64x112xbf16> to vector<64x112xbf16>
    %26 = arith.extf %25 : vector<64x112xbf16> to vector<64x112xf32>
    %c4_22 = arith.constant 4 : index
    %c0_23 = arith.constant 0 : index
    %c0_24 = arith.constant 0 : index
    %27 = vector.load %arg5[%c4_22, %c0_23, %c0_24] : memref<5x64x112xbf16, #tpu.memory_space<vmem>>, vector<1x64x112xbf16>
    %28 = vector.shape_cast %27 : vector<1x64x112xbf16> to vector<64x112xbf16>
    %29 = arith.extf %28 : vector<64x112xbf16> to vector<64x112xf32>
    %c0_25 = arith.constant 0 : index
    %c0_26 = arith.constant 0 : index
    %c0_27 = arith.constant 0 : index
    %30 = vector.load %arg3[%c0_25, %c0_26, %c0_27] : memref<2x120x64xbf16, #tpu.memory_space<vmem>>, vector<1x120x64xbf16>
    %31 = vector.shape_cast %30 : vector<1x120x64xbf16> to vector<120x64xbf16>
    %32 = arith.extf %31 : vector<120x64xbf16> to vector<120x64xf32>
    %c1_28 = arith.constant 1 : index
    %c0_29 = arith.constant 0 : index
    %c0_30 = arith.constant 0 : index
    %33 = vector.load %arg3[%c1_28, %c0_29, %c0_30] : memref<2x120x64xbf16, #tpu.memory_space<vmem>>, vector<1x120x64xbf16>
    %34 = vector.shape_cast %33 : vector<1x120x64xbf16> to vector<120x64xbf16>
    %35 = arith.extf %34 : vector<120x64xbf16> to vector<120x64xf32>
    %c0_31 = arith.constant 0 : index
    %c0_32 = arith.constant 0 : index
    %c0_33 = arith.constant 0 : index
    %36 = vector.load %arg4[%c0_31, %c0_32, %c0_33] : memref<2x18x30xbf16, #tpu.memory_space<vmem>>, vector<1x18x30xbf16>
    %37 = vector.shape_cast %36 : vector<1x18x30xbf16> to vector<18x30xbf16>
    %38 = arith.extf %37 : vector<18x30xbf16> to vector<18x30xf32>
    %c1_34 = arith.constant 1 : index
    %c0_35 = arith.constant 0 : index
    %c0_36 = arith.constant 0 : index
    %39 = vector.load %arg4[%c1_34, %c0_35, %c0_36] : memref<2x18x30xbf16, #tpu.memory_space<vmem>>, vector<1x18x30xbf16>
    %40 = vector.shape_cast %39 : vector<1x18x30xbf16> to vector<18x30xbf16>
    %41 = arith.extf %40 : vector<18x30xbf16> to vector<18x30xf32>
    %c0_37 = arith.constant 0 : index
    %c0_38 = arith.constant 0 : index
    %c0_39 = arith.constant 0 : index
    %42 = vector.load %arg6[%c0_37, %c0_38, %c0_39] : memref<2x112x64xbf16, #tpu.memory_space<vmem>>, vector<1x112x64xbf16>
    %43 = vector.shape_cast %42 : vector<1x112x64xbf16> to vector<112x64xbf16>
    %44 = arith.extf %43 : vector<112x64xbf16> to vector<112x64xf32>
    %c1_40 = arith.constant 1 : index
    %c0_41 = arith.constant 0 : index
    %c0_42 = arith.constant 0 : index
    %45 = vector.load %arg6[%c1_40, %c0_41, %c0_42] : memref<2x112x64xbf16, #tpu.memory_space<vmem>>, vector<1x112x64xbf16>
    %46 = vector.shape_cast %45 : vector<1x112x64xbf16> to vector<112x64xbf16>
    %47 = arith.extf %46 : vector<112x64xbf16> to vector<112x64xf32>
    %c0_43 = arith.constant 0 : index
    %c0_44 = arith.constant 0 : index
    %c0_45 = arith.constant 0 : index
    %48 = vector.load %arg7[%c0_43, %c0_44, %c0_45] : memref<2x8x14xbf16, #tpu.memory_space<vmem>>, vector<1x8x14xbf16>
    %49 = vector.shape_cast %48 : vector<1x8x14xbf16> to vector<8x14xbf16>
    %50 = arith.extf %49 : vector<8x14xbf16> to vector<8x14xf32>
    %c1_46 = arith.constant 1 : index
    %c0_47 = arith.constant 0 : index
    %c0_48 = arith.constant 0 : index
    %51 = vector.load %arg7[%c1_46, %c0_47, %c0_48] : memref<2x8x14xbf16, #tpu.memory_space<vmem>>, vector<1x8x14xbf16>
    %52 = vector.shape_cast %51 : vector<1x8x14xbf16> to vector<8x14xbf16>
    %53 = arith.extf %52 : vector<8x14xbf16> to vector<8x14xf32>
    %c0_49 = arith.constant 0 : index
    %c0_50 = arith.constant 0 : index
    %c0_51 = arith.constant 0 : index
    %54 = vector.load %arg1[%c0_49, %c0_50, %c0_51] : memref<2x34x96xbf16, #tpu.memory_space<vmem>>, vector<1x34x96xbf16>
    %55 = vector.shape_cast %54 : vector<1x34x96xbf16> to vector<34x96xbf16>
    %56 = arith.extf %55 : vector<34x96xbf16> to vector<34x96xf32>
    %57 = vector.extract_strided_slice %56 {offsets = [0, 0], sizes = [30, 96], strides = [1, 1]} : vector<34x96xf32> to vector<30x96xf32>
    %cst = arith.constant dense<0.000000e+00> : vector<30x120xf32>
    %58 = tpu.matmul %57, %2, %cst {dimension_numbers = #tpu.dot_dimension_numbers<[1], [0], [0], [1], [0, 0, 1, 1], [], []>} : vector<30x96xf32>, vector<96x120xf32>, vector<30x120xf32> -> vector<30x120xf32>
    %59 = vector.extract_strided_slice %56 {offsets = [1, 0], sizes = [30, 96], strides = [1, 1]} : vector<34x96xf32> to vector<30x96xf32>
    %cst_52 = arith.constant dense<0.000000e+00> : vector<30x120xf32>
    %60 = tpu.matmul %59, %5, %cst_52 {dimension_numbers = #tpu.dot_dimension_numbers<[1], [0], [0], [1], [0, 0, 1, 1], [], []>} : vector<30x96xf32>, vector<96x120xf32>, vector<30x120xf32> -> vector<30x120xf32>
    %61 = arith.addf %58, %60 : vector<30x120xf32>
    %62 = vector.extract_strided_slice %56 {offsets = [2, 0], sizes = [30, 96], strides = [1, 1]} : vector<34x96xf32> to vector<30x96xf32>
    %cst_53 = arith.constant dense<0.000000e+00> : vector<30x120xf32>
    %63 = tpu.matmul %62, %8, %cst_53 {dimension_numbers = #tpu.dot_dimension_numbers<[1], [0], [0], [1], [0, 0, 1, 1], [], []>} : vector<30x96xf32>, vector<96x120xf32>, vector<30x120xf32> -> vector<30x120xf32>
    %64 = arith.addf %61, %63 : vector<30x120xf32>
    %65 = vector.extract_strided_slice %56 {offsets = [3, 0], sizes = [30, 96], strides = [1, 1]} : vector<34x96xf32> to vector<30x96xf32>
    %cst_54 = arith.constant dense<0.000000e+00> : vector<30x120xf32>
    %66 = tpu.matmul %65, %11, %cst_54 {dimension_numbers = #tpu.dot_dimension_numbers<[1], [0], [0], [1], [0, 0, 1, 1], [], []>} : vector<30x96xf32>, vector<96x120xf32>, vector<30x120xf32> -> vector<30x120xf32>
    %67 = arith.addf %64, %66 : vector<30x120xf32>
    %68 = vector.extract_strided_slice %56 {offsets = [4, 0], sizes = [30, 96], strides = [1, 1]} : vector<34x96xf32> to vector<30x96xf32>
    %cst_55 = arith.constant dense<0.000000e+00> : vector<30x120xf32>
    %69 = tpu.matmul %68, %14, %cst_55 {dimension_numbers = #tpu.dot_dimension_numbers<[1], [0], [0], [1], [0, 0, 1, 1], [], []>} : vector<30x96xf32>, vector<96x120xf32>, vector<30x120xf32> -> vector<30x120xf32>
    %70 = arith.addf %67, %69 : vector<30x120xf32>
    %cst_56 = arith.constant 0.000000e+00 : f32
    %71 = vector.broadcast %cst_56 : f32 to vector<30x120xf32>
    %72 = arith.maximumf %70, %71 : vector<30x120xf32>
    %cst_57 = arith.constant dense<0.000000e+00> : vector<30x64xf32>
    %73 = tpu.matmul %72, %32, %cst_57 {dimension_numbers = #tpu.dot_dimension_numbers<[1], [0], [0], [1], [0, 0, 1, 1], [], []>} : vector<30x120xf32>, vector<120x64xf32>, vector<30x64xf32> -> vector<30x64xf32>
    %cst_58 = arith.constant dense<0.000000e+00> : vector<30x64xf32>
    %74 = tpu.matmul %72, %35, %cst_58 {dimension_numbers = #tpu.dot_dimension_numbers<[1], [0], [0], [1], [0, 0, 1, 1], [], []>} : vector<30x120xf32>, vector<120x64xf32>, vector<30x64xf32> -> vector<30x64xf32>
    %75 = arith.maximumf %73, %74 : vector<30x64xf32>
    %cst_59 = arith.constant dense<0.000000e+00> : vector<18x64xf32>
    %76 = tpu.matmul %38, %75, %cst_59 {dimension_numbers = #tpu.dot_dimension_numbers<[1], [0], [0], [1], [0, 0, 1, 1], [], []>} : vector<18x30xf32>, vector<30x64xf32>, vector<18x64xf32> -> vector<18x64xf32>
    %cst_60 = arith.constant dense<0.000000e+00> : vector<18x64xf32>
    %77 = tpu.matmul %41, %75, %cst_60 {dimension_numbers = #tpu.dot_dimension_numbers<[1], [0], [0], [1], [0, 0, 1, 1], [], []>} : vector<18x30xf32>, vector<30x64xf32>, vector<18x64xf32> -> vector<18x64xf32>
    %78 = arith.maximumf %76, %77 : vector<18x64xf32>
    %79 = vector.extract_strided_slice %78 {offsets = [0, 0], sizes = [14, 64], strides = [1, 1]} : vector<18x64xf32> to vector<14x64xf32>
    %cst_61 = arith.constant dense<0.000000e+00> : vector<14x112xf32>
    %80 = tpu.matmul %79, %17, %cst_61 {dimension_numbers = #tpu.dot_dimension_numbers<[1], [0], [0], [1], [0, 0, 1, 1], [], []>} : vector<14x64xf32>, vector<64x112xf32>, vector<14x112xf32> -> vector<14x112xf32>
    %81 = vector.extract_strided_slice %78 {offsets = [1, 0], sizes = [14, 64], strides = [1, 1]} : vector<18x64xf32> to vector<14x64xf32>
    %cst_62 = arith.constant dense<0.000000e+00> : vector<14x112xf32>
    %82 = tpu.matmul %81, %20, %cst_62 {dimension_numbers = #tpu.dot_dimension_numbers<[1], [0], [0], [1], [0, 0, 1, 1], [], []>} : vector<14x64xf32>, vector<64x112xf32>, vector<14x112xf32> -> vector<14x112xf32>
    %83 = arith.addf %80, %82 : vector<14x112xf32>
    %84 = vector.extract_strided_slice %78 {offsets = [2, 0], sizes = [14, 64], strides = [1, 1]} : vector<18x64xf32> to vector<14x64xf32>
    %cst_63 = arith.constant dense<0.000000e+00> : vector<14x112xf32>
    %85 = tpu.matmul %84, %23, %cst_63 {dimension_numbers = #tpu.dot_dimension_numbers<[1], [0], [0], [1], [0, 0, 1, 1], [], []>} : vector<14x64xf32>, vector<64x112xf32>, vector<14x112xf32> -> vector<14x112xf32>
    %86 = arith.addf %83, %85 : vector<14x112xf32>
    %87 = vector.extract_strided_slice %78 {offsets = [3, 0], sizes = [14, 64], strides = [1, 1]} : vector<18x64xf32> to vector<14x64xf32>
    %cst_64 = arith.constant dense<0.000000e+00> : vector<14x112xf32>
    %88 = tpu.matmul %87, %26, %cst_64 {dimension_numbers = #tpu.dot_dimension_numbers<[1], [0], [0], [1], [0, 0, 1, 1], [], []>} : vector<14x64xf32>, vector<64x112xf32>, vector<14x112xf32> -> vector<14x112xf32>
    %89 = arith.addf %86, %88 : vector<14x112xf32>
    %90 = vector.extract_strided_slice %78 {offsets = [4, 0], sizes = [14, 64], strides = [1, 1]} : vector<18x64xf32> to vector<14x64xf32>
    %cst_65 = arith.constant dense<0.000000e+00> : vector<14x112xf32>
    %91 = tpu.matmul %90, %29, %cst_65 {dimension_numbers = #tpu.dot_dimension_numbers<[1], [0], [0], [1], [0, 0, 1, 1], [], []>} : vector<14x64xf32>, vector<64x112xf32>, vector<14x112xf32> -> vector<14x112xf32>
    %92 = arith.addf %89, %91 : vector<14x112xf32>
    %cst_66 = arith.constant 0.000000e+00 : f32
    %93 = vector.broadcast %cst_66 : f32 to vector<14x112xf32>
    %94 = arith.maximumf %92, %93 : vector<14x112xf32>
    %cst_67 = arith.constant dense<0.000000e+00> : vector<14x64xf32>
    %95 = tpu.matmul %94, %44, %cst_67 {dimension_numbers = #tpu.dot_dimension_numbers<[1], [0], [0], [1], [0, 0, 1, 1], [], []>} : vector<14x112xf32>, vector<112x64xf32>, vector<14x64xf32> -> vector<14x64xf32>
    %cst_68 = arith.constant dense<0.000000e+00> : vector<14x64xf32>
    %96 = tpu.matmul %94, %47, %cst_68 {dimension_numbers = #tpu.dot_dimension_numbers<[1], [0], [0], [1], [0, 0, 1, 1], [], []>} : vector<14x112xf32>, vector<112x64xf32>, vector<14x64xf32> -> vector<14x64xf32>
    %97 = arith.maximumf %95, %96 : vector<14x64xf32>
    %cst_69 = arith.constant dense<0.000000e+00> : vector<8x64xf32>
    %98 = tpu.matmul %50, %97, %cst_69 {dimension_numbers = #tpu.dot_dimension_numbers<[1], [0], [0], [1], [0, 0, 1, 1], [], []>} : vector<8x14xf32>, vector<14x64xf32>, vector<8x64xf32> -> vector<8x64xf32>
    %cst_70 = arith.constant dense<0.000000e+00> : vector<8x64xf32>
    %99 = tpu.matmul %53, %97, %cst_70 {dimension_numbers = #tpu.dot_dimension_numbers<[1], [0], [0], [1], [0, 0, 1, 1], [], []>} : vector<8x14xf32>, vector<14x64xf32>, vector<8x64xf32> -> vector<8x64xf32>
    %100 = arith.maximumf %98, %99 : vector<8x64xf32>
    %101 = arith.truncf %100 : vector<8x64xf32> to vector<8x64xbf16>
    %c0_71 = arith.constant 0 : index
    %c0_72 = arith.constant 0 : index
    %c0_73 = arith.constant 0 : index
    %102 = vector.load %arg8[%c0_71, %c0_72, %c0_73] : memref<2x8x64xbf16, #tpu.memory_space<vmem>>, vector<1x8x64xbf16>
    %103 = vector.shape_cast %102 : vector<1x8x64xbf16> to vector<8x64xbf16>
    %104 = vector.shape_cast %101 : vector<8x64xbf16> to vector<1x8x64xbf16>
    tpu.vector_store %arg8[%c0_71, %c0_72, %c0_73], %104 {strides = array<i32>} : memref<2x8x64xbf16, #tpu.memory_space<vmem>>, vector<1x8x64xbf16>,
    %c1_74 = arith.constant 1 : index
    %c0_75 = arith.constant 0 : index
    %c0_76 = arith.constant 0 : index
    %105 = vector.load %arg1[%c1_74, %c0_75, %c0_76] : memref<2x34x96xbf16, #tpu.memory_space<vmem>>, vector<1x34x96xbf16>
    %106 = vector.shape_cast %105 : vector<1x34x96xbf16> to vector<34x96xbf16>
    %107 = arith.extf %106 : vector<34x96xbf16> to vector<34x96xf32>
    %108 = vector.extract_strided_slice %107 {offsets = [0, 0], sizes = [30, 96], strides = [1, 1]} : vector<34x96xf32> to vector<30x96xf32>
    %cst_77 = arith.constant dense<0.000000e+00> : vector<30x120xf32>
    %109 = tpu.matmul %108, %2, %cst_77 {dimension_numbers = #tpu.dot_dimension_numbers<[1], [0], [0], [1], [0, 0, 1, 1], [], []>} : vector<30x96xf32>, vector<96x120xf32>, vector<30x120xf32> -> vector<30x120xf32>
    %110 = vector.extract_strided_slice %107 {offsets = [1, 0], sizes = [30, 96], strides = [1, 1]} : vector<34x96xf32> to vector<30x96xf32>
    %cst_78 = arith.constant dense<0.000000e+00> : vector<30x120xf32>
    %111 = tpu.matmul %110, %5, %cst_78 {dimension_numbers = #tpu.dot_dimension_numbers<[1], [0], [0], [1], [0, 0, 1, 1], [], []>} : vector<30x96xf32>, vector<96x120xf32>, vector<30x120xf32> -> vector<30x120xf32>
    %112 = arith.addf %109, %111 : vector<30x120xf32>
    %113 = vector.extract_strided_slice %107 {offsets = [2, 0], sizes = [30, 96], strides = [1, 1]} : vector<34x96xf32> to vector<30x96xf32>
    %cst_79 = arith.constant dense<0.000000e+00> : vector<30x120xf32>
    %114 = tpu.matmul %113, %8, %cst_79 {dimension_numbers = #tpu.dot_dimension_numbers<[1], [0], [0], [1], [0, 0, 1, 1], [], []>} : vector<30x96xf32>, vector<96x120xf32>, vector<30x120xf32> -> vector<30x120xf32>
    %115 = arith.addf %112, %114 : vector<30x120xf32>
    %116 = vector.extract_strided_slice %107 {offsets = [3, 0], sizes = [30, 96], strides = [1, 1]} : vector<34x96xf32> to vector<30x96xf32>
    %cst_80 = arith.constant dense<0.000000e+00> : vector<30x120xf32>
    %117 = tpu.matmul %116, %11, %cst_80 {dimension_numbers = #tpu.dot_dimension_numbers<[1], [0], [0], [1], [0, 0, 1, 1], [], []>} : vector<30x96xf32>, vector<96x120xf32>, vector<30x120xf32> -> vector<30x120xf32>
    %118 = arith.addf %115, %117 : vector<30x120xf32>
    %119 = vector.extract_strided_slice %107 {offsets = [4, 0], sizes = [30, 96], strides = [1, 1]} : vector<34x96xf32> to vector<30x96xf32>
    %cst_81 = arith.constant dense<0.000000e+00> : vector<30x120xf32>
    %120 = tpu.matmul %119, %14, %cst_81 {dimension_numbers = #tpu.dot_dimension_numbers<[1], [0], [0], [1], [0, 0, 1, 1], [], []>} : vector<30x96xf32>, vector<96x120xf32>, vector<30x120xf32> -> vector<30x120xf32>
    %121 = arith.addf %118, %120 : vector<30x120xf32>
    %cst_82 = arith.constant 0.000000e+00 : f32
    %122 = vector.broadcast %cst_82 : f32 to vector<30x120xf32>
    %123 = arith.maximumf %121, %122 : vector<30x120xf32>
    %cst_83 = arith.constant dense<0.000000e+00> : vector<30x64xf32>
    %124 = tpu.matmul %123, %32, %cst_83 {dimension_numbers = #tpu.dot_dimension_numbers<[1], [0], [0], [1], [0, 0, 1, 1], [], []>} : vector<30x120xf32>, vector<120x64xf32>, vector<30x64xf32> -> vector<30x64xf32>
    %cst_84 = arith.constant dense<0.000000e+00> : vector<30x64xf32>
    %125 = tpu.matmul %123, %35, %cst_84 {dimension_numbers = #tpu.dot_dimension_numbers<[1], [0], [0], [1], [0, 0, 1, 1], [], []>} : vector<30x120xf32>, vector<120x64xf32>, vector<30x64xf32> -> vector<30x64xf32>
    %126 = arith.maximumf %124, %125 : vector<30x64xf32>
    %cst_85 = arith.constant dense<0.000000e+00> : vector<18x64xf32>
    %127 = tpu.matmul %38, %126, %cst_85 {dimension_numbers = #tpu.dot_dimension_numbers<[1], [0], [0], [1], [0, 0, 1, 1], [], []>} : vector<18x30xf32>, vector<30x64xf32>, vector<18x64xf32> -> vector<18x64xf32>
    %cst_86 = arith.constant dense<0.000000e+00> : vector<18x64xf32>
    %128 = tpu.matmul %41, %126, %cst_86 {dimension_numbers = #tpu.dot_dimension_numbers<[1], [0], [0], [1], [0, 0, 1, 1], [], []>} : vector<18x30xf32>, vector<30x64xf32>, vector<18x64xf32> -> vector<18x64xf32>
    %129 = arith.maximumf %127, %128 : vector<18x64xf32>
    %130 = vector.extract_strided_slice %129 {offsets = [0, 0], sizes = [14, 64], strides = [1, 1]} : vector<18x64xf32> to vector<14x64xf32>
    %cst_87 = arith.constant dense<0.000000e+00> : vector<14x112xf32>
    %131 = tpu.matmul %130, %17, %cst_87 {dimension_numbers = #tpu.dot_dimension_numbers<[1], [0], [0], [1], [0, 0, 1, 1], [], []>} : vector<14x64xf32>, vector<64x112xf32>, vector<14x112xf32> -> vector<14x112xf32>
    %132 = vector.extract_strided_slice %129 {offsets = [1, 0], sizes = [14, 64], strides = [1, 1]} : vector<18x64xf32> to vector<14x64xf32>
    %cst_88 = arith.constant dense<0.000000e+00> : vector<14x112xf32>
    %133 = tpu.matmul %132, %20, %cst_88 {dimension_numbers = #tpu.dot_dimension_numbers<[1], [0], [0], [1], [0, 0, 1, 1], [], []>} : vector<14x64xf32>, vector<64x112xf32>, vector<14x112xf32> -> vector<14x112xf32>
    %134 = arith.addf %131, %133 : vector<14x112xf32>
    %135 = vector.extract_strided_slice %129 {offsets = [2, 0], sizes = [14, 64], strides = [1, 1]} : vector<18x64xf32> to vector<14x64xf32>
    %cst_89 = arith.constant dense<0.000000e+00> : vector<14x112xf32>
    %136 = tpu.matmul %135, %23, %cst_89 {dimension_numbers = #tpu.dot_dimension_numbers<[1], [0], [0], [1], [0, 0, 1, 1], [], []>} : vector<14x64xf32>, vector<64x112xf32>, vector<14x112xf32> -> vector<14x112xf32>
    %137 = arith.addf %134, %136 : vector<14x112xf32>
    %138 = vector.extract_strided_slice %129 {offsets = [3, 0], sizes = [14, 64], strides = [1, 1]} : vector<18x64xf32> to vector<14x64xf32>
    %cst_90 = arith.constant dense<0.000000e+00> : vector<14x112xf32>
    %139 = tpu.matmul %138, %26, %cst_90 {dimension_numbers = #tpu.dot_dimension_numbers<[1], [0], [0], [1], [0, 0, 1, 1], [], []>} : vector<14x64xf32>, vector<64x112xf32>, vector<14x112xf32> -> vector<14x112xf32>
    %140 = arith.addf %137, %139 : vector<14x112xf32>
    %141 = vector.extract_strided_slice %129 {offsets = [4, 0], sizes = [14, 64], strides = [1, 1]} : vector<18x64xf32> to vector<14x64xf32>
    %cst_91 = arith.constant dense<0.000000e+00> : vector<14x112xf32>
    %142 = tpu.matmul %141, %29, %cst_91 {dimension_numbers = #tpu.dot_dimension_numbers<[1], [0], [0], [1], [0, 0, 1, 1], [], []>} : vector<14x64xf32>, vector<64x112xf32>, vector<14x112xf32> -> vector<14x112xf32>
    %143 = arith.addf %140, %142 : vector<14x112xf32>
    %cst_92 = arith.constant 0.000000e+00 : f32
    %144 = vector.broadcast %cst_92 : f32 to vector<14x112xf32>
    %145 = arith.maximumf %143, %144 : vector<14x112xf32>
    %cst_93 = arith.constant dense<0.000000e+00> : vector<14x64xf32>
    %146 = tpu.matmul %145, %44, %cst_93 {dimension_numbers = #tpu.dot_dimension_numbers<[1], [0], [0], [1], [0, 0, 1, 1], [], []>} : vector<14x112xf32>, vector<112x64xf32>, vector<14x64xf32> -> vector<14x64xf32>
    %cst_94 = arith.constant dense<0.000000e+00> : vector<14x64xf32>
    %147 = tpu.matmul %145, %47, %cst_94 {dimension_numbers = #tpu.dot_dimension_numbers<[1], [0], [0], [1], [0, 0, 1, 1], [], []>} : vector<14x112xf32>, vector<112x64xf32>, vector<14x64xf32> -> vector<14x64xf32>
    %148 = arith.maximumf %146, %147 : vector<14x64xf32>
    %cst_95 = arith.constant dense<0.000000e+00> : vector<8x64xf32>
    %149 = tpu.matmul %50, %148, %cst_95 {dimension_numbers = #tpu.dot_dimension_numbers<[1], [0], [0], [1], [0, 0, 1, 1], [], []>} : vector<8x14xf32>, vector<14x64xf32>, vector<8x64xf32> -> vector<8x64xf32>
    %cst_96 = arith.constant dense<0.000000e+00> : vector<8x64xf32>
    %150 = tpu.matmul %53, %148, %cst_96 {dimension_numbers = #tpu.dot_dimension_numbers<[1], [0], [0], [1], [0, 0, 1, 1], [], []>} : vector<8x14xf32>, vector<14x64xf32>, vector<8x64xf32> -> vector<8x64xf32>
    %151 = arith.maximumf %149, %150 : vector<8x64xf32>
    %152 = arith.truncf %151 : vector<8x64xf32> to vector<8x64xbf16>
    %c1_97 = arith.constant 1 : index
    %c0_98 = arith.constant 0 : index
    %c0_99 = arith.constant 0 : index
    %153 = vector.load %arg8[%c1_97, %c0_98, %c0_99] : memref<2x8x64xbf16, #tpu.memory_space<vmem>>, vector<1x8x64xbf16>
    %154 = vector.shape_cast %153 : vector<1x8x64xbf16> to vector<8x64xbf16>
    %155 = vector.shape_cast %152 : vector<8x64xbf16> to vector<1x8x64xbf16>
    tpu.vector_store %arg8[%c1_97, %c0_98, %c0_99], %155 {strides = array<i32>} : memref<2x8x64xbf16, #tpu.memory_space<vmem>>, vector<1x8x64xbf16>,
    return
  }
  func.func @transform_0(%arg0: i32) -> (i32, i32, i32) {
    %c0_i32 = arith.constant 0 : i32
    %c0_i32_0 = arith.constant 0 : i32
    %c0_i32_1 = arith.constant 0 : i32
    return %arg0, %c0_i32, %c0_i32_0 : i32, i32, i32
  }
  func.func @transform_1(%arg0: i32) -> (i32, i32, i32) {
    %c0_i32 = arith.constant 0 : i32
    %c0_i32_0 = arith.constant 0 : i32
    %c0_i32_1 = arith.constant 0 : i32
    %c0_i32_2 = arith.constant 0 : i32
    return %c0_i32, %c0_i32_0, %c0_i32_1 : i32, i32, i32
  }
  func.func @transform_2(%arg0: i32) -> (i32, i32, i32) {
    %c0_i32 = arith.constant 0 : i32
    %c0_i32_0 = arith.constant 0 : i32
    %c0_i32_1 = arith.constant 0 : i32
    %c0_i32_2 = arith.constant 0 : i32
    return %c0_i32, %c0_i32_0, %c0_i32_1 : i32, i32, i32
  }
  func.func @transform_3(%arg0: i32) -> (i32, i32, i32) {
    %c0_i32 = arith.constant 0 : i32
    %c0_i32_0 = arith.constant 0 : i32
    %c0_i32_1 = arith.constant 0 : i32
    %c0_i32_2 = arith.constant 0 : i32
    return %c0_i32, %c0_i32_0, %c0_i32_1 : i32, i32, i32
  }
  func.func @transform_4(%arg0: i32) -> (i32, i32, i32) {
    %c0_i32 = arith.constant 0 : i32
    %c0_i32_0 = arith.constant 0 : i32
    %c0_i32_1 = arith.constant 0 : i32
    %c0_i32_2 = arith.constant 0 : i32
    return %c0_i32, %c0_i32_0, %c0_i32_1 : i32, i32, i32
  }
  func.func @transform_5(%arg0: i32) -> (i32, i32, i32) {
    %c0_i32 = arith.constant 0 : i32
    %c0_i32_0 = arith.constant 0 : i32
    %c0_i32_1 = arith.constant 0 : i32
    %c0_i32_2 = arith.constant 0 : i32
    return %c0_i32, %c0_i32_0, %c0_i32_1 : i32, i32, i32
  }
  func.func @transform_6(%arg0: i32) -> (i32, i32, i32) {
    %c0_i32 = arith.constant 0 : i32
    %c0_i32_0 = arith.constant 0 : i32
    %c0_i32_1 = arith.constant 0 : i32
    %c0_i32_2 = arith.constant 0 : i32
    return %c0_i32, %c0_i32_0, %c0_i32_1 : i32, i32, i32
  }
  func.func @transform_7(%arg0: i32) -> (i32, i32, i32) {
    %c0_i32 = arith.constant 0 : i32
    %c0_i32_0 = arith.constant 0 : i32
    %c0_i32_1 = arith.constant 0 : i32
    return %arg0, %c0_i32, %c0_i32_0 : i32, i32, i32
  }
}

</mosaic_0001>

<bundles_post_ra>
// kernel: cnn2_forward.3
= control target key start
LH: loop header
LB: loop body
LE: loop exit
PB: predicated region body
PF: predicated region fallthrough
CT: control target
= control target key end

     0   :  { %vm357_vm0 = vcmask 261120   ;;  %vm374_vm1 = vcmask 80896   ;;  %s682_s1 = inlined_call_operand.vmem [shape: bf16[512,32], index: 1, kind: input, shape index: {}]   ;;  %s683_s0 = inlined_call_operand.vmem [shape: bf16[8,512], index: 0, kind: input, shape index: {}]   ;;  %s684_s2 = inlined_call_operand.vmem [shape: bf16[32,10], index: 2, kind: input, shape index: {}]   ;;  %s685_s3 = inlined_call_operand.vmem [shape: f32[8,10], index: 3, kind: output, shape index: {}]  }
   0x1   :  { %v524_v0 = vld [vmem:[%s682_s1 + $0x38] sm:$0xff]  ;;  %v523_v4 = vld [vmem:[%s682_s1 + $0x30] sm:$0xff]  ;;  %v522_v8 = vld [vmem:[%s682_s1 + $0x28] sm:$0xff] }
   0x2   :  { %v532_v1 = vld [vmem:[%s682_s1 + $0x78] sm:$0xff]  ;;  %287 = vmatpush.bf16.msra.mxu0 %v524_v0  ;;  %v531_v5 = vld [vmem:[%s682_s1 + $0x70] sm:$0xff]  ;;  %v530_v9 = vld [vmem:[%s682_s1 + $0x68] sm:$0xff] }
   0x3   :  { %v540_v2 = vld [vmem:[%s682_s1 + $0xb8] sm:$0xff]  ;;  %300 = vmatpush.bf16.msra.mxu1 %v532_v1  ;;  %v539_v6 = vld [vmem:[%s682_s1 + $0xb0] sm:$0xff]  ;;  %v538_v10 = vld [vmem:[%s682_s1 + $0xa8] sm:$0xff] }
   0x4   :  { %v548_v3 = vld [vmem:[%s682_s1 + $0xf8] sm:$0xff]  ;;  %313 = vmatpush.bf16.msra.mxu2 %v540_v2  ;;  %v547_v7 = vld [vmem:[%s682_s1 + $0xf0] sm:$0xff]  ;;  %v546_v11 = vld [vmem:[%s682_s1 + $0xe8] sm:$0xff] }
   0x5   :  { %326 = vmatpush.bf16.msra.mxu3 %v548_v3  ;;  %v521_v12 = vld [vmem:[%s682_s1 + $0x20] sm:$0xff]  ;;  %v520_v16 = vld [vmem:[%s682_s1 + $0x18] sm:$0xff]  ;;  %v519_v20 = vld [vmem:[%s682_s1 + $0x10] sm:$0xff] }
   0x6   :  { %288 = vmatpush.bf16.msra.mxu0 %v523_v4  ;;  %v529_v13 = vld [vmem:[%s682_s1 + $0x60] sm:$0xff]  ;;  %v528_v17 = vld [vmem:[%s682_s1 + $0x58] sm:$0xff]  ;;  %v527_v21 = vld [vmem:[%s682_s1 + $0x50] sm:$0xff] }
   0x7   :  { %301 = vmatpush.bf16.msra.mxu1 %v531_v5  ;;  %v537_v14 = vld [vmem:[%s682_s1 + $0xa0] sm:$0xff]  ;;  %v536_v18 = vld [vmem:[%s682_s1 + $0x98] sm:$0xff]  ;;  %v535_v22 = vld [vmem:[%s682_s1 + $0x90] sm:$0xff] }
   0x8   :  { %314 = vmatpush.bf16.msra.mxu2 %v539_v6  ;;  %v545_v15 = vld [vmem:[%s682_s1 + $0xe0] sm:$0xff]  ;;  %v544_v19 = vld [vmem:[%s682_s1 + $0xd8] sm:$0xff]  ;;  %v543_v23 = vld [vmem:[%s682_s1 + $0xd0] sm:$0xff] }
   0x9   :  { %327 = vmatpush.bf16.msra.mxu3 %v547_v7  ;;  %v518_v24 = vld [vmem:[%s682_s1 + $0x8] sm:$0xff]  ;;  %v15_v26 = vld [vmem:[%s683_s0] sm:$0xff] }
   0xa   :  { %289 = vmatpush.bf16.msra.mxu0 %v522_v8  ;;  %v526_v25 = vld [vmem:[%s682_s1 + $0x48] sm:$0xff]  ;;  %v83_v30 = vunpack.c.l.b16 %v15_v26  ;;  %v84_v31 = vunpack.c.h.b16 %v15_v26  ;;  %v517_v32 = vld [vmem:[%s682_s1] sm:$0xff] }
   0xb   :  { %302 = vmatpush.bf16.msra.mxu1 %v530_v9  ;;  %v534_v27 = vld [vmem:[%s682_s1 + $0x88] sm:$0xff]  ;;  %v525_v33 = vld [vmem:[%s682_s1 + $0x40] sm:$0xff] }
   0xc   :  { %315 = vmatpush.bf16.msra.mxu2 %v538_v10  ;;  %v542_v28 = vld [vmem:[%s682_s1 + $0xc8] sm:$0xff]  ;;  %v533_v36 = vld [vmem:[%s682_s1 + $0x80] sm:$0xff]  ;;  %v87_v39 = vpack.c.b16 %v83_v30, %v83_v30  ;;  %v88_v40 = vpack.c.b16 %v84_v31, %v84_v31 }
   0xd   :  { %328 = vmatpush.bf16.msra.mxu3 %v546_v11  ;;  %v16_v29 = vld [vmem:[%s683_s0 + $0x8] sm:$0xff]  ;;  %v541_v37 = vld [vmem:[%s682_s1 + $0xc0] sm:$0xff] }
   0xe   :  { %290 = vmatpush.bf16.msra.mxu0 %v521_v12  ;;  %v85_v34 = vunpack.c.l.b16 %v16_v29  ;;  %v86_v35 = vunpack.c.h.b16 %v16_v29  ;;  %v550_v38 = vld [vmem:[%s684_s2 + $0x8] sm:$0xff]  ;;  %v549_v43 = vld [vmem:[%s684_s2] sm:$0xff] }
   0xf   :  { %303 = vmatpush.bf16.msra.mxu1 %v529_v13 }
  0x10   :  { %316 = vmatpush.bf16.msra.mxu2 %v537_v14  ;;  %v89_v41 = vpack.c.b16 %v85_v34, %v85_v34  ;;  %v90_v42 = vpack.c.b16 %v86_v35, %v86_v35 }
  0x11   :  { %329 = vmatpush.bf16.msra.mxu3 %v545_v15 }
  0x12   :  { %291 = vmatpush.bf16.msra.mxu0 %v520_v16 }
  0x13   :  { %304 = vmatpush.bf16.msra.mxu1 %v528_v17 }
  0x14   :  { %317 = vmatpush.bf16.msra.mxu2 %v536_v18 }
  0x15   :  { %330 = vmatpush.bf16.msra.mxu3 %v544_v19 }
  0x16   :  { %292 = vmatpush.bf16.msra.mxu0 %v519_v20 }
  0x17   :  { %305 = vmatpush.bf16.msra.mxu1 %v527_v21 }
  0x18   :  { %318 = vmatpush.bf16.msra.mxu2 %v535_v22 }
  0x19   :  { %331 = vmatpush.bf16.msra.mxu3 %v543_v23 }
  0x1a   :  { %293 = vmatpush.bf16.msra.mxu0 %v518_v24 }
  0x1b   :  { %306 = vmatpush.bf16.msra.mxu1 %v526_v25 }
  0x1c   :  { %319 = vmatpush.bf16.msra.mxu2 %v534_v27 }
  0x1d   :  { %332 = vmatpush.bf16.msra.mxu3 %v542_v28 }
  0x1e   :  { %294 = vmatpush.bf16.msra.mxu0 %v517_v32 }
  0x1f   :  { %307 = vmatpush.bf16.msra.mxu1 %v525_v33 }
  0x20   :  { %320 = vmatpush.bf16.msra.mxu2 %v533_v36 }
  0x21   :  { %333 = vmatpush.bf16.msra.mxu3 %v541_v37  ;;  %295 = vmatmul.bf16.vlgmr.msra.gmra.mxu0 %v87_v39 }
  0x22   :  { %367 = vmatpush.bf16.msrb.mxu0 %v550_v38  ;;  %308 = vmatmul.bf16.vlgmr.msra.gmra.mxu1 %v88_v40 }
  0x23   :  { %321 = vmatmul.bf16.vlgmr.msra.gmra.mxu2 %v89_v41 }
  0x24   :  { %334 = vmatmul.bf16.vlgmr.msra.gmra.mxu3 %v90_v42 }
  0x26   :  { %368 = vmatpush.bf16.msrb.mxu0 %v549_v43 }
  0x9e   :  { %v296_v44 = vpop.f32.mrf.mxu0 }
  0x9f   :  { %v309_v45 = vpop.f32.mrf.mxu1 }
  0xa0   :  { %v310_v46 = vadd.f32 %v309_v45, %v296_v44 }
  0xa6   :  { %v322_v47 = vpop.f32.mrf.mxu2  ;;  %v298_v50 = vpop.f32.mrf.mxu0 }
  0xa7   :  { %v335_v48 = vpop.f32.mrf.mxu3  ;;  %v323_v49 = vadd.f32 %v322_v47, %v310_v46  ;;  %v311_v51 = vpop.f32.mrf.mxu1 }
  0xa9   :  { %v336_v52 = vadd.f32 %v335_v48, %v323_v49 }
  0xab   :  { %v339_v53 = vmax.f32 %v336_v52, 0.0 }
  0xad   :  { %v340_v54 = vpack.c.bf16 %v339_v53, %v339_v53 }
  0xae   :  { %v324_v55 = vpop.f32.mrf.mxu2 }
  0xaf   :  { %v337_v56 = vpop.f32.mrf.mxu3  ;;  %516 = vmatmul.msk.bf16.vlgmr.msrb.gmra.mxu0 %vm357_vm0, %v340_v54 }
 0x12c   :  { %v370_v57 = vpop.f32.mrf.mxu0 }
 0x12d   :  { %375 = vst.msk [vmem:[%s685_s3] sm:$0xff] %vm374_vm1, %v370_v57 }
 0x134   :  { %v372_v58 = vpop.f32.mrf.mxu0 }

// kernel: cnn2_forward.2
= control target key start
LH: loop header
LB: loop body
LE: loop exit
PB: predicated region body
PF: predicated region fallthrough
CT: control target
= control target key end

     0   :  { %vm384_vm0 = vcmask 1046528   ;;  %vm467_vm1 = vcmask 1045504   ;;  %vm392_vm2 = vcmask 785408   ;;  %vm517_vm3 = vcmask 1044480   ;;  %s3839_s1 = inlined_call_operand.vmem [shape: bf16[5,96,120], index: 1, kind: input, shape index: {}]   ;;  %s3840_s0 = inlined_call_operand.vmem [shape: bf16[2,34,96], index: 0, kind: input, shape index: {}]   ;;  %s3841_s2 = inlined_call_operand.vmem [shape: bf16[2,120,64], index: 2, kind: input, shape index: {}]   ;;  %s3842_s3 = inlined_call_operand.vmem [shape: bf16[2,18,30], index: 3, kind: input, shape index: {}]   ;;  %s3843_s4 = inlined_call_operand.vmem [shape: bf16[5,64,112], index: 4, kind: input, shape index: {}]   ;;  %s3844_s5 = inlined_call_operand.vmem [shape: bf16[2,112,64], index: 5, kind: input, shape index: {}]   ;;  %s3845_s6 = inlined_call_operand.vmem [shape: bf16[2,8,14], index: 6, kind: input, shape index: {}]   ;;  %s3846_s7 = inlined_call_operand.vmem [shape: bf16[2,8,64], index: 7, kind: output, shape index: {}]  }
   0x1   :  { %v2373_v0 = vld [vmem:[%s3839_s1 + $0x58] sm:$0xff]   ;;  %v2378_v1 = vld [vmem:[%s3839_s1 + $0x28] sm:$0xff]   ;;  %v2397_v8 = vld [vmem:[%s3839_s1 + $0x50] sm:$0xff]   ;;  %vm568_vm4 = vcmask 1043456   ;;  %vm623_vm5 = vcmask 982016   ;;  %vm698_vm6 = vcmask 244736  }
   0x2   :  { %v2383_v2 = vld [vmem:[%s3839_s1 + $0x88] sm:$0xff]   ;;  %v3901_v3 = vunpack.c.h.bf16 %v2373_v0  ;;  %v3900_v4 = vunpack.c.h.bf16 %v2378_v1  ;;  %v3898_v6 = vunpack.c.l.bf16 %v2373_v0  ;;  %v2392_v7 = vld [vmem:[%s3839_s1 + $0xb8] sm:$0xff]   ;;  %v2402_v9 = vld [vmem:[%s3839_s1 + $0x20] sm:$0xff]   ;;  %v3896_v10 = vunpack.c.l.bf16 %v2378_v1 }
   0x3   :  { %v3935_v5 = vunpack.c.h.bf16 %v2383_v2  ;;  %v3933_v11 = vunpack.c.l.bf16 %v2383_v2  ;;  %v3854_v12 = vunpack.c.h.bf16 %v2392_v7  ;;  %v2410_v13 = vld [vmem:[%s3839_s1 + $0x80] sm:$0xff]   ;;  %v2415_v14 = vld [vmem:[%s3839_s1 + $0xb0] sm:$0xff]   ;;  %v3895_v15 = vunpack.c.h.bf16 %v2397_v8  ;;  %v2433_v20 = vld [vmem:[%s3839_s1 + $0x48] sm:$0xff]  }
   0x4   :  { %4040 = vst [vmem:[#allocation2_spill] sm:$0xff] %v2415_v14  ;;  %405 = vmatpush.msra.mxu0 %v3901_v3  ;;  %442 = vmatpush.msra.mxu1 %v3900_v4  ;;  %v3893_v16 = vunpack.c.h.bf16 %v2402_v9  ;;  %v3852_v17 = vunpack.c.l.bf16 %v2392_v7  ;;  %v3932_v18 = vunpack.c.h.bf16 %v2410_v13  ;;  %v3851_v19 = vunpack.c.h.bf16 %v2415_v14  ;;  %v2438_v21 = vld [vmem:[%s3839_s1 + $0x18] sm:$0xff]   ;;  %v2454_v25 = vld [vmem:[%s3839_s1 + $0xa8] sm:$0xff]   ;;  %v2477_v32 = vld [vmem:[%s3839_s1 + $0x40] sm:$0xff]  }
   0x5   :  { %487 = vmatpush.msra.mxu2 %v3935_v5  ;;  %539 = vmatpush.msra.mxu3 %v3854_v12  ;;  %v3881_v22 = vunpack.c.l.bf16 %v2397_v8  ;;  %v3879_v23 = vunpack.c.l.bf16 %v2402_v9  ;;  %v2449_v24 = vld [vmem:[%s3839_s1 + $0x78] sm:$0xff]   ;;  %4041 = vst [vmem:[#allocation3_spill] sm:$0xff] %v2454_v25  ;;  %v3931_v26 = vunpack.c.l.bf16 %v2410_v13  ;;  %v3850_v27 = vunpack.c.l.bf16 %v2415_v14  ;;  %v2482_v33 = vld [vmem:[%s3839_s1 + $0x10] sm:$0xff]   ;;  %v2498_v37 = vld [vmem:[%s3839_s1 + $0xa0] sm:$0xff]  }
   0x6   :  { %406 = vmatpush.msra.mxu0 %v3898_v6  ;;  %443 = vmatpush.msra.mxu1 %v3896_v10  ;;  %v3874_v28 = vunpack.c.h.bf16 %v2433_v20  ;;  %v3867_v29 = vunpack.c.h.bf16 %v2438_v21  ;;  %v3930_v30 = vunpack.c.h.bf16 %v2449_v24  ;;  %v3849_v31 = vunpack.c.h.bf16 %v2454_v25  ;;  %v2493_v36 = vld [vmem:[%s3839_s1 + $0x70] sm:$0xff]   ;;  %4042 = vst [vmem:[#allocation4_spill] sm:$0xff] %v2498_v37  ;;  %v2521_v44 = vld [vmem:[%s3839_s1 + $0x38] sm:$0xff]   ;;  %v2526_v45 = vld [vmem:[%s3839_s1 + $0x8] sm:$0xff]  }
   0x7   :  { %488 = vmatpush.msra.mxu2 %v3933_v11  ;;  %540 = vmatpush.msra.mxu3 %v3852_v17  ;;  %v3865_v34 = vunpack.c.l.bf16 %v2433_v20  ;;  %v3864_v35 = vunpack.c.l.bf16 %v2438_v21  ;;  %v3929_v38 = vunpack.c.l.bf16 %v2449_v24  ;;  %v3848_v39 = vunpack.c.l.bf16 %v2454_v25  ;;  %v2243_v46 = vld [vmem:[%s3840_s0] sm:$0xff]   ;;  %v2540_v49 = vld [vmem:[%s3839_s1 + $0x68] sm:$0xff]   ;;  %v2545_v50 = vld [vmem:[%s3839_s1 + $0x98] sm:$0xff]  }
   0x8   :  { %407 = vmatpush.msra.mxu0 %v3895_v15  ;;  %444 = vmatpush.msra.mxu1 %v3893_v16  ;;  %v3863_v40 = vunpack.c.h.bf16 %v2477_v32  ;;  %v3860_v41 = vunpack.c.h.bf16 %v2482_v33  ;;  %v3927_v42 = vunpack.c.h.bf16 %v2493_v36  ;;  %v3847_v43 = vunpack.c.h.bf16 %v2498_v37  ;;  %4043 = vst [vmem:[#allocation5_spill] sm:$0xff] %v2545_v50  ;;  %v2572_v59 = vld [vmem:[%s3839_s1 + $0x30] sm:$0xff]   ;;  %v2577_v60 = vld [vmem:[%s3839_s1] sm:$0xff]   ;;  %v2835_v16 = vld [vmem:[%s3841_s2 + $0x58] sm:$0xff]  }
   0x9   :  { %489 = vmatpush.msra.mxu2 %v3932_v18  ;;  %541 = vmatpush.msra.mxu3 %v3851_v19  ;;  %v3859_v47 = vunpack.c.l.bf16 %v2477_v32  ;;  %v3857_v48 = vunpack.c.l.bf16 %v2482_v33  ;;  %v3926_v51 = vunpack.c.l.bf16 %v2493_v36  ;;  %v3853_v52 = vunpack.c.l.bf16 %v2498_v37  ;;  %v2588_v63 = vld [vmem:[%s3839_s1 + $0x60] sm:$0xff]   ;;  %v2845_v15 = vld [vmem:[%s3841_s2 + $0x18] sm:$0xff]   ;;  %v2856_v6 = vld [vmem:[%s3841_s2 + $0x50] sm:$0xff]  }
   0xa   :  { %408 = vmatpush.msra.mxu0 %v3881_v22  ;;  %445 = vmatpush.msra.mxu1 %v3879_v23  ;;  %v3856_v53 = vunpack.c.h.bf16 %v2521_v44  ;;  %v3855_v54 = vunpack.c.h.bf16 %v2526_v45  ;;  %v2559_v55 = vunpack.c.l.bf16 %v2243_v46  ;;  %v2561_v56 = vunpack.c.h.bf16 %v2243_v46  ;;  %v2593_v46 = vld [vmem:[%s3839_s1 + $0x90] sm:$0xff]   ;;  %v2718_v23 = vld [vmem:[%s3839_s1 + $0xc8] sm:$0xff]  }
   0xb   :  { %490 = vmatpush.msra.mxu2 %v3931_v26  ;;  %542 = vmatpush.msra.mxu3 %v3850_v27  ;;  %v3924_v57 = vunpack.c.h.bf16 %v2540_v49  ;;  %v3858_v58 = vunpack.c.h.bf16 %v2545_v50  ;;  %v3861_v61 = vunpack.c.l.bf16 %v2521_v44  ;;  %v3862_v62 = vunpack.c.l.bf16 %v2526_v45  ;;  %4044 = vst [vmem:[#allocation6_spill] sm:$0xff] %v2593_v46  ;;  %v2867_v3 = vld [vmem:[%s3841_s2 + $0x10] sm:$0xff]  }
   0xc   :  { %409 = vmatpush.msra.mxu0 %v3874_v28  ;;  %446 = vmatpush.msra.mxu1 %v3867_v29  ;;  %v3872_v27 = vunpack.c.h.bf16 %v2577_v60  ;;  %v385_v19 = vrot.slane %v2559_v55, 1  ;;  %v386_v17 = vrot.slane %v2561_v56, 1  ;;  %v3869_v12 = vunpack.c.h.bf16 %v2593_v46 }
   0xd   :  { %491 = vmatpush.msra.mxu2 %v3930_v30  ;;  %543 = vmatpush.msra.mxu3 %v3849_v31  ;;  %v3868_v31 = vunpack.c.h.bf16 %v2572_v59  ;;  %v3873_v29 = vunpack.c.l.bf16 %v2593_v46  ;;  %v3902_v10 = vunpack.c.h.bf16 %v2845_v15  ;;  %v3907_v4 = vunpack.c.h.bf16 %v2856_v6 }
   0xe   :  { %410 = vmatpush.msra.mxu0 %v3865_v34  ;;  %447 = vmatpush.msra.mxu1 %v3864_v35  ;;  %v387_v35 = vsel %vm384_vm0, %v385_v19, %v386_v17  ;;  %v2659_v19 = vld [vmem:[%s3839_s1 + $0xe0] sm:$0xff]   ;;  %vm780_vm7 = vcmask 523264   ;;  %vm938_vm8 = vcmask 916480   ;;  %vm993_vm9 = vcmask 113664  }
   0xf   :  { %492 = vmatpush.msra.mxu2 %v3929_v38  ;;  %544 = vmatpush.msra.mxu3 %v3848_v39  ;;  %v3866_v39 = vunpack.c.l.bf16 %v2545_v50  ;;  %vm1045_vm10 = vcmask 519168  }
  0x10   :  { %411 = vmatpush.msra.mxu0 %v3863_v40  ;;  %448 = vmatpush.msra.mxu1 %v3860_v41  ;;  %v2629_v41 = vld [vmem:[%s3839_s1 + $0xe8] sm:$0xff]   ;;  %v519_v40 = vrot.slane %v2561_v56, 3 }
  0x11   :  { %493 = vmatpush.msra.mxu2 %v3927_v42  ;;  %545 = vmatpush.msra.mxu3 %v3847_v43  ;;  %v3923_v43 = vunpack.c.l.bf16 %v2540_v49 }
  0x12   :  { %412 = vmatpush.msra.mxu0 %v3859_v47  ;;  %449 = vmatpush.msra.mxu1 %v3857_v48  ;;  %v2328_v48 = vld [vmem:[%s3840_s0 + $0x8] sm:$0xff]   ;;  %v3870_v47 = vunpack.c.l.bf16 %v2577_v60 }
  0x13   :  { %494 = vmatpush.msra.mxu2 %v3926_v51  ;;  %546 = vmatpush.msra.mxu3 %v3853_v52  ;;  %v3922_v52 = vunpack.c.h.bf16 %v2588_v63  ;;  %v2643_v34 = vunpack.c.l.bf16 %v2328_v48 }
  0x14   :  { %413 = vmatpush.msra.mxu0 %v3856_v53  ;;  %450 = vmatpush.msra.mxu1 %v3855_v54  ;;  %v468_v54 = vrot.slane %v2559_v55, 2  ;;  %v469_v53 = vrot.slane %v2561_v56, 2 }
  0x15   :  { %495 = vmatpush.msra.mxu2 %v3924_v57  ;;  %547 = vmatpush.msra.mxu3 %v3858_v58  ;;  %v3871_v58 = vunpack.c.l.bf16 %v2572_v59 }
  0x16   :  { %414 = vmatpush.msra.mxu0 %v3861_v61  ;;  %451 = vmatpush.msra.mxu1 %v3862_v62  ;;  %v3921_v61 = vunpack.c.l.bf16 %v2588_v63  ;;  %v518_v62 = vrot.slane %v2559_v55, 3 }
  0x17   :  { %496 = vmatpush.msra.mxu2 %v3923_v43  ;;  %548 = vmatpush.msra.mxu3 %v3866_v39  ;;  %v470_v39 = vsel %vm467_vm1, %v468_v54, %v469_v53 }
  0x18   :  { %415 = vmatpush.msra.mxu0 %v3868_v31  ;;  %452 = vmatpush.msra.mxu1 %v3872_v27  ;;  %v3875_v31 = vunpack.c.h.bf16 %v2629_v41  ;;  %v520_v54 = vsel %vm517_vm3, %v518_v62, %v519_v40  ;;  %v521_v62 = vrot.slane %v2643_v34, 3  ;;  %v2249_v27 = vunpack.c.h.bf16 %v2328_v48 }
  0x19   :  { %497 = vmatpush.msra.mxu2 %v3922_v52  ;;  %549 = vmatpush.msra.mxu3 %v3869_v12  ;;  %v3876_v12 = vunpack.c.l.bf16 %v2629_v41 }
  0x1a   :  { %416 = vmatpush.msra.mxu0 %v3871_v58  ;;  %453 = vmatpush.msra.mxu1 %v3870_v47  ;;  %v388_v47 = vrot.slane %v2643_v34, 1  ;;  %v471_v58 = vrot.slane %v2643_v34, 2  ;;  %v473_v48 = vrot.slane %v2249_v27, 2 }
  0x1b   :  { %498 = vmatpush.msra.mxu2 %v3921_v61  ;;  %1808 = vmatmul.msk.f32.vlgmr.msra.gmra.mxu0 %vm392_vm2, %v387_v35  ;;  %v3878_v35 = vunpack.c.h.bf16 %v2659_v19 }
  0x1c   :  { %1812 = vmatmul.msk.f32.vlgmr.msra.gmra.mxu1 %vm392_vm2, %v2559_v55  ;;  %1816 = vmatmul.msk.f32.vlgmr.msra.gmra.mxu2 %vm392_vm2, %v470_v39  ;;  %v389_v39 = vsel %vm384_vm0, %v386_v17, %v388_v47  ;;  %v472_v28 = vsel %vm467_vm1, %v469_v53, %v471_v58  ;;  %v390_v17 = vrot.slane %v2249_v27, 1 }
  0x1d   :  { %550 = vmatpush.msra.mxu3 %v3873_v29  ;;  %590 = vmatpush.msrb.mxu0 %v3875_v31  ;;  %v2684_v29 = vld [vmem:[%s3839_s1 + $0xd8] sm:$0xff]   ;;  %v522_v31 = vsel %vm517_vm3, %v519_v40, %v521_v62  ;;  %v2703_v40 = vld [vmem:[%s3839_s1 + $0xd0] sm:$0xff]  }
  0x1e   :  { %1820 = vmatmul.msk.f32.vlgmr.msra.gmra.mxu3 %vm392_vm2, %v520_v54  ;;  %v3877_v54 = vunpack.c.l.bf16 %v2659_v19  ;;  %v3888_v53 = vunpack.c.l.bf16 %v2684_v29 }
  0x1f   :  { %591 = vmatpush.msrb.mxu0 %v3876_v12  ;;  %v3880_v12 = vunpack.c.h.bf16 %v2684_v29 }
  0x21   :  { %592 = vmatpush.msrb.mxu0 %v3878_v35  ;;  %v474_v35 = vsel %vm467_vm1, %v471_v58, %v473_v48  ;;  %v3884_v58 = vunpack.c.h.bf16 %v2718_v23 }
  0x23   :  { %1809 = vmatmul.msk.f32.gmra.mxu0 %vm392_vm2, %v389_v39  ;;  %v523_v39 = vrot.slane %v2249_v27, 3 }
  0x24   :  { %1813 = vmatmul.msk.f32.gmra.mxu1 %vm392_vm2, %v2561_v56  ;;  %1817 = vmatmul.msk.f32.gmra.mxu2 %vm392_vm2, %v472_v28  ;;  %v391_v28 = vsel %vm384_vm0, %v388_v47, %v390_v17 }
  0x25   :  { %593 = vmatpush.msrb.mxu0 %v3877_v54  ;;  %v374_v54 = vld [vmem:[%s3840_s0 + $0x10] sm:$0x1]  ;;  %v524_v47 = vsel %vm517_vm3, %v521_v62, %v523_v39  ;;  %v2735_v62 = vld [vmem:[%s3839_s1 + $0xc0] sm:$0xff]  }
  0x26   :  { %1821 = vmatmul.msk.f32.gmra.mxu3 %vm392_vm2, %v522_v31  ;;  %v3883_v31 = vunpack.c.h.bf16 %v2703_v40  ;;  %v379_v22 = vunpack.c.l.bf16 %v374_v54 }
  0x27   :  { %594 = vmatpush.msrb.mxu0 %v3880_v12  ;;  %v3882_v12 = vunpack.c.l.bf16 %v2703_v40 }
  0x29   :  { %595 = vmatpush.msrb.mxu0 %v3888_v53 }
  0x2b   :  { %1810 = vmatmul.msk.f32.gmra.mxu0 %vm392_vm2, %v391_v28  ;;  %v525_v28 = vrot.slane %v379_v22, 3 }
  0x2c   :  { %1814 = vmatmul.msk.f32.gmra.mxu1 %vm392_vm2, %v2643_v34  ;;  %1818 = vmatmul.msk.f32.gmra.mxu2 %vm392_vm2, %v474_v35  ;;  %v3887_v35 = vunpack.c.l.bf16 %v2718_v23 }
  0x2d   :  { %596 = vmatpush.msrb.mxu0 %v3883_v31  ;;  %v526_v54 = vsel %vm517_vm3, %v523_v39, %v525_v28  ;;  %v570_v31 = vrot.slane %v2561_v56, 4  ;;  %v576_v28 = vrot.slane %v379_v22, 4  ;;  %v2779_v22 = vld [vmem:[%s3841_s2 + $0x30] sm:$0xff]  }
  0x2e   :  { %1822 = vmatmul.msk.f32.gmra.mxu3 %vm392_vm2, %v524_v47  ;;  %v3886_v47 = vunpack.c.h.bf16 %v2735_v62 }
  0x2f   :  { %597 = vmatpush.msrb.mxu0 %v3882_v12  ;;  %v569_v12 = vrot.slane %v2559_v55, 4  ;;  %v572_v55 = vrot.slane %v2643_v34, 4  ;;  %v2772_v34 = vld [vmem:[%s3841_s2 + $0x70] sm:$0xff]  }
  0x31   :  { %598 = vmatpush.msrb.mxu0 %v3884_v58  ;;  %v3885_v58 = vunpack.c.l.bf16 %v2735_v62  ;;  %v573_v56 = vsel %vm568_vm4, %v570_v31, %v572_v55 }
  0x33   :  { %1811 = vmatmul.msk.f32.gmra.mxu0 %vm392_vm2, %v390_v17  ;;  %v571_v17 = vsel %vm568_vm4, %v569_v12, %v570_v31  ;;  %v2767_v12 = vld [vmem:[%s3841_s2 + $0x38] sm:$0xff]   ;;  %v3918_v31 = vunpack.c.h.bf16 %v2772_v34 }
  0x34   :  { %1815 = vmatmul.msk.f32.gmra.mxu1 %vm392_vm2, %v2249_v27  ;;  %1819 = vmatmul.msk.f32.gmra.mxu2 %vm392_vm2, %v473_v48  ;;  %v574_v48 = vrot.slane %v2249_v27, 4  ;;  %v3892_v27 = vunpack.c.l.bf16 %v2767_v12 }
  0x35   :  { %599 = vmatpush.msrb.mxu0 %v3887_v35  ;;  %666 = vmatpush.msrb.mxu2 %v3918_v31  ;;  %v3938_v31 = vunpack.c.h.bf16 %v2767_v12 }
  0x36   :  { %1823 = vmatmul.msk.f32.gmra.mxu3 %vm392_vm2, %v526_v54  ;;  %v575_v39 = vsel %vm568_vm4, %v572_v55, %v574_v48  ;;  %v577_v54 = vsel %vm568_vm4, %v574_v48, %v576_v28  ;;  %637 = vmatpush.msrb.mxu1 %v3892_v27  ;;  %v3917_v55 = vunpack.c.l.bf16 %v2772_v34  ;;  %v2791_v48 = vld [vmem:[%s3841_s2 + $0x68] sm:$0xff]  }
  0x37   :  { %600 = vmatpush.msrb.mxu0 %v3886_v47  ;;  %v2801_v28 = vld [vmem:[%s3841_s2 + $0x28] sm:$0xff]   ;;  %v2812_v47 = vld [vmem:[%s3841_s2 + $0x60] sm:$0xff]  }
  0x38   :  { %667 = vmatpush.msrb.mxu2 %v3917_v55  ;;  %v3894_v35 = vunpack.c.l.bf16 %v2801_v28  ;;  %v3908_v53 = vunpack.c.h.bf16 %v2812_v47 }
  0x39   :  { %601 = vmatpush.msrb.mxu0 %v3885_v58  ;;  %v3912_v58 = vunpack.c.l.bf16 %v2791_v48 }
  0x3b   :  { %1824 = vmatmul.msk.f32.vlgmr.msrb.gmra.mxu0 %vm392_vm2, %v571_v17  ;;  %v3891_v17 = vunpack.c.h.bf16 %v2779_v22 }
  0x3d   :  { %638 = vmatpush.msrb.mxu1 %v3891_v17  ;;  %v3905_v17 = vunpack.c.l.bf16 %v2812_v47 }
  0x43   :  { %1825 = vmatmul.msk.f32.gmra.mxu0 %vm392_vm2, %v573_v56  ;;  %v3889_v56 = vunpack.c.l.bf16 %v2779_v22 }
  0x45   :  { %639 = vmatpush.msrb.mxu1 %v3889_v56  ;;  %v2823_v56 = vld [vmem:[%s3841_s2 + $0x20] sm:$0xff]  }
  0x46   :  { %v3899_v27 = vunpack.c.l.bf16 %v2823_v56 }
  0x4b   :  { %1826 = vmatmul.msk.f32.gmra.mxu0 %vm392_vm2, %v575_v39  ;;  %v3914_v39 = vunpack.c.h.bf16 %v2791_v48 }
  0x4d   :  { %668 = vmatpush.msrb.mxu2 %v3914_v39  ;;  %v2911_v39 = vld [vmem:[%s3841_s2] sm:$0xff]  }
  0x4e   :  { %v3934_v55 = vunpack.c.l.bf16 %v2911_v39 }
  0x4f   :  { %669 = vmatpush.msrb.mxu2 %v3912_v58 }
  0x51   :  { %670 = vmatpush.msrb.mxu2 %v3908_v53 }
  0x53   :  { %1827 = vmatmul.msk.f32.gmra.mxu0 %vm392_vm2, %v577_v54  ;;  %v3890_v54 = vunpack.c.h.bf16 %v2801_v28  ;;  %671 = vmatpush.msrb.mxu2 %v3905_v17  ;;  %v2879_v17 = vld [vmem:[%s3841_s2 + $0x48] sm:$0xff]  }
  0x55   :  { %640 = vmatpush.msrb.mxu1 %v3890_v54  ;;  %v3897_v54 = vunpack.c.h.bf16 %v2823_v56 }
  0x57   :  { %641 = vmatpush.msrb.mxu1 %v3894_v35  ;;  %v3903_v35 = vunpack.c.h.bf16 %v2835_v16 }
  0x59   :  { %642 = vmatpush.msrb.mxu1 %v3897_v54  ;;  %672 = vmatpush.msrb.mxu2 %v3903_v35  ;;  %v3904_v54 = vunpack.c.l.bf16 %v2835_v16  ;;  %v3910_v35 = vunpack.c.l.bf16 %v2856_v6 }
  0x5b   :  { %643 = vmatpush.msrb.mxu1 %v3899_v27  ;;  %673 = vmatpush.msrb.mxu2 %v3904_v54  ;;  %v3906_v27 = vunpack.c.l.bf16 %v2845_v15  ;;  %v3911_v54 = vunpack.c.l.bf16 %v2867_v3 }
  0x5d   :  { %644 = vmatpush.msrb.mxu1 %v3902_v10  ;;  %674 = vmatpush.msrb.mxu2 %v3907_v4  ;;  %v3909_v10 = vunpack.c.h.bf16 %v2867_v3  ;;  %v2889_v4 = vld [vmem:[%s3841_s2 + $0x8] sm:$0xff]  }
  0x5e   :  { %v3915_v53 = vunpack.c.h.bf16 %v2889_v4 }
  0x5f   :  { %645 = vmatpush.msrb.mxu1 %v3906_v27  ;;  %675 = vmatpush.msrb.mxu2 %v3910_v35  ;;  %v3913_v27 = vunpack.c.h.bf16 %v2879_v17  ;;  %v2900_v35 = vld [vmem:[%s3841_s2 + $0x40] sm:$0xff]  }
  0x60   :  { %v3920_v58 = vunpack.c.h.bf16 %v2900_v35 }
  0x61   :  { %646 = vmatpush.msrb.mxu1 %v3909_v10  ;;  %676 = vmatpush.msrb.mxu2 %v3913_v27  ;;  %v3916_v10 = vunpack.c.l.bf16 %v2879_v17 }
  0x63   :  { %647 = vmatpush.msrb.mxu1 %v3911_v54  ;;  %677 = vmatpush.msrb.mxu2 %v3916_v10  ;;  %v3919_v54 = vunpack.c.l.bf16 %v2889_v4  ;;  %v3928_v10 = vunpack.c.l.bf16 %v2900_v35 }
  0x65   :  { %648 = vmatpush.msrb.mxu1 %v3915_v53  ;;  %678 = vmatpush.msrb.mxu2 %v3920_v58  ;;  %v3925_v53 = vunpack.c.h.bf16 %v2911_v39 }
  0x67   :  { %649 = vmatpush.msrb.mxu1 %v3919_v54  ;;  %679 = vmatpush.msrb.mxu2 %v3928_v10 }
  0x69   :  { %650 = vmatpush.msrb.mxu1 %v3925_v53  ;;  %680 = vmatpush.msrb.mxu2 %v3938_v31 }
  0x6b   :  { %651 = vmatpush.msrb.mxu1 %v3934_v55 }
  0x98   :  { %v418_v27 = vpop.f32.mrf.mxu0 }
  0x99   :  { %v455_v58 = vpop.f32.mrf.mxu1 }
  0x9a   :  { %v456_v53 = vadd.f32 %v455_v58, %v418_v27 }
  0x9f   :  { %v500_v52 = vpop.f32.mrf.mxu2 }
  0xa0   :  { %v421_v54 = vpop.f32.mrf.mxu0  ;;  %v512_v42 = vadd.f32 %v500_v52, %v456_v53 }
  0xa1   :  { %v552_v43 = vpop.f32.mrf.mxu3  ;;  %v458_v51 = vpop.f32.mrf.mxu1 }
  0xa2   :  { %v564_v38 = vadd.f32 %v552_v43, %v512_v42  ;;  %v459_v18 = vadd.f32 %v458_v51, %v421_v54 }
  0xa7   :  { %v503_v10 = vpop.f32.mrf.mxu2 }
  0xa8   :  { %v424_v61 = vpop.f32.mrf.mxu0  ;;  %v513_v55 = vadd.f32 %v503_v10, %v459_v18 }
  0xa9   :  { %v555_v30 = vpop.f32.mrf.mxu3  ;;  %v461_v46 = vpop.f32.mrf.mxu1 }
  0xaa   :  { %v565_v50 = vadd.f32 %v555_v30, %v513_v55  ;;  %v462_v58 = vadd.f32 %v461_v46, %v424_v61 }
  0xaf   :  { %v506_v31 = vpop.f32.mrf.mxu2 }
  0xb0   :  { %v427_v57 = vpop.f32.mrf.mxu0  ;;  %v514_v53 = vadd.f32 %v506_v31, %v462_v58 }
  0xb1   :  { %v558_v52 = vpop.f32.mrf.mxu3 }
  0xb2   :  { %v566_v10 = vadd.f32 %v558_v52, %v514_v53 }
  0xb8   :  { %v603_v26 = vpop.f32.mrf.mxu0 }
  0xb9   :  { %v615_v11 = vadd.f32 %v603_v26, %v564_v38  ;;  %v464_v26 = vpop.f32.mrf.mxu1  ;;  %v561_v54 = vpop.f32.mrf.mxu3 }
  0xba   :  { %v465_v38 = vadd.f32 %v464_v26, %v427_v57 }
  0xbb   :  { %v619_v5 = vmax.f32 %v615_v11, 0.0  ;;  %v509_v11 = vpop.f32.mrf.mxu2 }
  0xbc   :  { %v515_v51 = vadd.f32 %v509_v11, %v465_v38 }
  0xbd   :  { %1828 = vmatmul.msk.f32.vlgmr.msrb.gmra.mxu1 %vm623_vm5, %v619_v5  ;;  %1832 = vmatmul.msk.f32.vlgmr.msrb.gmra.mxu2 %vm623_vm5, %v619_v5 }
  0xbe   :  { %v567_v30 = vadd.f32 %v561_v54, %v515_v51  ;;  %v2955_v51 = vld [vmem:[%s3842_s3 + $0x8] sm:$0x1]  ;;  %v2964_v54 = vld [vmem:[%s3842_s3 + $0xc] sm:$0xff]  }
  0xbf   :  { %4046 = vst [vmem:[#allocation8_spill] sm:$0xff] %v2955_v51 }
  0xc0   :  { %v606_v37 = vpop.f32.mrf.mxu0  ;;  %4047 = vst [vmem:[#allocation9_spill] sm:$0xff] %v2964_v54 }
  0xc1   :  { %v616_v27 = vadd.f32 %v606_v37, %v565_v50 }
  0xc3   :  { %v620_v42 = vmax.f32 %v616_v27, 0.0 }
  0xc5   :  { %1829 = vmatmul.msk.f32.gmra.mxu1 %vm623_vm5, %v620_v42  ;;  %1833 = vmatmul.msk.f32.gmra.mxu2 %vm623_vm5, %v620_v42 }
  0xc8   :  { %v609_v18 = vpop.f32.mrf.mxu0 }
  0xc9   :  { %v617_v43 = vadd.f32 %v609_v18, %v566_v10  ;;  %v2941_v10 = vld [vmem:[%s3842_s3] sm:$0xff]  }
  0xca   :  { %4045 = vst [vmem:[#allocation7_spill] sm:$0xff] %v2941_v10  ;;  %v3948_v18 = vunpack.c.l.bf16 %v2941_v10 }
  0xcb   :  { %v621_v5 = vmax.f32 %v617_v43, 0.0  ;;  %v3945_v43 = vunpack.c.h.bf16 %v2941_v10 }
  0xcd   :  { %1830 = vmatmul.msk.f32.gmra.mxu1 %vm623_vm5, %v621_v5  ;;  %1834 = vmatmul.msk.f32.gmra.mxu2 %vm623_vm5, %v621_v5  ;;  %v3943_v5 = vunpack.c.l.bf16 %v2955_v51 }
  0xd0   :  { %v612_v37 = vpop.f32.mrf.mxu0 }
  0xd1   :  { %v618_v50 = vadd.f32 %v612_v37, %v567_v30  ;;  %v3949_v30 = vunpack.c.l.bf16 %v2964_v54  ;;  %v3946_v37 = vunpack.c.h.bf16 %v2964_v54 }
  0xd3   :  { %v622_v61 = vmax.f32 %v618_v50, 0.0  ;;  %v2977_v50 = vld [vmem:[%s3842_s3 + $0x14] sm:$0x1] }
  0xd4   :  { %4048 = vst [vmem:[#allocation10_spill] sm:$0xff] %v2977_v50 }
  0xd5   :  { %1831 = vmatmul.msk.f32.gmra.mxu1 %vm623_vm5, %v622_v61  ;;  %1835 = vmatmul.msk.f32.gmra.mxu2 %vm623_vm5, %v622_v61  ;;  %v3944_v61 = vunpack.c.l.bf16 %v2977_v50  ;;  %v3128_v50 = vld [vmem:[%s3843_s4 + $0x88] sm:$0xff]  }
  0xd6   :  { %4058 = vst [vmem:[#allocation17_spill] sm:$0xff] %v3128_v50 }
 0x13a   :  { %v653_v46 = vpop.f32.mrf.mxu1 }
 0x140   :  { %v682_v31 = vpop.f32.mrf.mxu2 }
 0x141   :  { %v694_v38 = vmax.f32 %v653_v46, %v682_v31  ;;  %v2986_v46 = vld [vmem:[%s3843_s4 + $0x18] sm:$0xff]  }
 0x142   :  { %v656_v55 = vpop.f32.mrf.mxu1  ;;  %v3959_v31 = vunpack.c.h.bf16 %v2986_v46 }
 0x144   :  { %820 = vmatpush.msra.mxu1 %v3959_v31  ;;  %v3078_v31 = vld [vmem:[%s3843_s4 + $0x48] sm:$0xff]  }
 0x148   :  { %v685_v57 = vpop.f32.mrf.mxu2 }
 0x149   :  { %v695_v11 = vmax.f32 %v656_v55, %v685_v57  ;;  %v3958_v55 = vunpack.c.l.bf16 %v2986_v46  ;;  %v2997_v57 = vld [vmem:[%s3843_s4 + $0x10] sm:$0xff]  }
 0x14a   :  { %v659_v58 = vpop.f32.mrf.mxu1 }
 0x14b   :  { %821 = vmatpush.msra.mxu1 %v3958_v55  ;;  %v3073_v55 = vld [vmem:[%s3843_s4 + $0x28] sm:$0xff]  }
 0x14c   :  { %4052 = vst [vmem:[#allocation14_spill] sm:$0xff] %v3073_v55  ;;  %v4055_v51 = vunpack.c.h.bf16 %v3073_v55 }
 0x150   :  { %v688_v27 = vpop.f32.mrf.mxu2 }
 0x151   :  { %v696_v26 = vmax.f32 %v659_v58, %v688_v27  ;;  %v3955_v58 = vunpack.c.h.bf16 %v2997_v57  ;;  %v3954_v27 = vunpack.c.l.bf16 %v2997_v57 }
 0x152   :  { %v662_v52 = vpop.f32.mrf.mxu1 }
 0x153   :  { %822 = vmatpush.msra.mxu1 %v3955_v58 }
 0x155   :  { %823 = vmatpush.msra.mxu1 %v3954_v27 }
 0x158   :  { %v691_v53 = vpop.f32.mrf.mxu2 }
 0x159   :  { %v697_v42 = vmax.f32 %v662_v52, %v691_v53  ;;  %v3004_v52 = vld [vmem:[%s3843_s4 + $0x8] sm:$0xff]   ;;  %v3009_v53 = vld [vmem:[%s3843_s4 + $0x38] sm:$0xff]  }
 0x15a   :  { %4049 = vst [vmem:[#allocation11_spill] sm:$0xff] %v3009_v53 }
 0x15b   :  { %1836 = vmatpush.msk.msrb.mxu3 %vm467_vm1, %v697_v42 }
 0x15d   :  { %724 = vmatpush.msrb.mxu3 %v696_v26 }
 0x15f   :  { %725 = vmatpush.msrb.mxu3 %v695_v11 }
 0x161   :  { %726 = vmatpush.msrb.mxu3 %v694_v38 }
 0x162   :  { %1837 = vmatmul.msk.f32.vlgmr.msrb.gmra.mxu3 %vm698_vm6, %v3948_v18 }
 0x163   :  { %1840 = vmatpush.msk.msra.mxu3 %vm467_vm1, %v697_v42  ;;  %v3014_v42 = vld [vmem:[%s3843_s4 + $0x58] sm:$0xff]  }
 0x165   :  { %759 = vmatpush.msra.mxu3 %v696_v26  ;;  %v3953_v26 = vunpack.c.h.bf16 %v3004_v52 }
 0x167   :  { %760 = vmatpush.msra.mxu3 %v695_v11  ;;  %v3947_v11 = vunpack.c.h.bf16 %v3009_v53  ;;  %824 = vmatpush.msra.mxu1 %v3953_v26  ;;  %v3062_v26 = vld [vmem:[%s3843_s4 + $0x98] sm:$0xff]  }
 0x168   :  { %4051 = vst [vmem:[#allocation13_spill] sm:$0xff] %v3062_v26  ;;  %v3964_v27 = vunpack.c.h.bf16 %v3062_v26 }
 0x169   :  { %761 = vmatpush.msra.mxu3 %v694_v38  ;;  %v3950_v38 = vunpack.c.h.bf16 %v3014_v42  ;;  %793 = vmatpush.msra.mxu0 %v3947_v11  ;;  %v3957_v11 = vunpack.c.l.bf16 %v3014_v42 }
 0x16a   :  { %1838 = vmatmul.msk.f32.gmra.mxu3 %vm698_vm6, %v3945_v43 }
 0x16b   :  { %850 = vmatpush.msra.mxu2 %v3950_v38  ;;  %v3051_v38 = vld [vmem:[%s3843_s4 + $0x50] sm:$0xff]  }
 0x16d   :  { %851 = vmatpush.msra.mxu2 %v3957_v11 }
 0x172   :  { %1839 = vmatmul.msk.f32.gmra.mxu3 %vm698_vm6, %v3943_v5  ;;  %v3952_v5 = vunpack.c.l.bf16 %v3004_v52 }
 0x174   :  { %825 = vmatpush.msra.mxu1 %v3952_v5  ;;  %v3962_v5 = vunpack.c.h.bf16 %v3051_v38 }
 0x176   :  { %852 = vmatpush.msra.mxu2 %v3962_v5  ;;  %v4054_v5 = vunpack.c.l.bf16 %v3062_v26 }
 0x17a   :  { %1841 = vmatmul.msk.f32.vlgmr.msra.gmra.mxu3 %vm698_vm6, %v3949_v30  ;;  %v3046_v30 = vld [vmem:[%s3843_s4 + $0x30] sm:$0xff]  }
 0x17b   :  { %4050 = vst [vmem:[#allocation12_spill] sm:$0xff] %v3046_v30  ;;  %v3965_v58 = vunpack.c.l.bf16 %v3046_v30 }
 0x182   :  { %1842 = vmatmul.msk.f32.gmra.mxu3 %vm698_vm6, %v3946_v37  ;;  %v3956_v37 = vunpack.c.l.bf16 %v3009_v53  ;;  %v3979_v53 = vunpack.c.h.bf16 %v3128_v50 }
 0x184   :  { %794 = vmatpush.msra.mxu0 %v3956_v37  ;;  %v3966_v37 = vunpack.c.l.bf16 %v3051_v38 }
 0x186   :  { %853 = vmatpush.msra.mxu2 %v3966_v37  ;;  %v3976_v37 = vunpack.c.l.bf16 %v3078_v31 }
 0x18a   :  { %1843 = vmatmul.msk.f32.gmra.mxu3 %vm698_vm6, %v3944_v61  ;;  %v3033_v61 = vld [vmem:[%s3843_s4] sm:$0xff]  }
 0x18b   :  { %v3951_v43 = vunpack.c.h.bf16 %v3033_v61  ;;  %v3960_v18 = vunpack.c.l.bf16 %v3033_v61 }
 0x18d   :  { %826 = vmatpush.msra.mxu1 %v3951_v43  ;;  %v3961_v43 = vunpack.c.h.bf16 %v3046_v30 }
 0x18f   :  { %827 = vmatpush.msra.mxu1 %v3960_v18  ;;  %795 = vmatpush.msra.mxu0 %v3961_v43  ;;  %v3095_v43 = vld [vmem:[%s3843_s4 + $0x90] sm:$0xff]  }
 0x190   :  { %4053 = vst [vmem:[#allocation15_spill] sm:$0xff] %v3095_v43  ;;  %v3968_v18 = vunpack.c.h.bf16 %v3095_v43  ;;  %v4059_v30 = vunpack.c.l.bf16 %v3095_v43 }
 0x191   :  { %919 = vmatpush.msrb.mxu1 %v3964_v27  ;;  %796 = vmatpush.msra.mxu0 %v3965_v58  ;;  %v4056_v27 = vunpack.c.h.bf16 %v3078_v31  ;;  %v3975_v58 = vunpack.c.l.bf16 %v3073_v55 }
 0x193   :  { %920 = vmatpush.msrb.mxu1 %v4054_v5  ;;  %797 = vmatpush.msra.mxu0 %v4055_v51  ;;  %v3112_v5 = vld [vmem:[%s3843_s4 + $0x20] sm:$0xff]  }
 0x194   :  { %854 = vmatpush.msra.mxu2 %v4056_v27  ;;  %4057 = vst [vmem:[#allocation16_spill] sm:$0xff] %v3112_v5  ;;  %v3117_v51 = vld [vmem:[%s3843_s4 + $0x40] sm:$0xff]   ;;  %v3977_v27 = vunpack.c.h.bf16 %v3112_v5  ;;  %v3982_v55 = vunpack.c.l.bf16 %v3112_v5  ;;  %v3169_v5 = vld [vmem:[%s3843_s4 + $0x70] sm:$0xff]  }
 0x195   :  { %921 = vmatpush.msrb.mxu1 %v3968_v18  ;;  %798 = vmatpush.msra.mxu0 %v3975_v58  ;;  %v3978_v18 = vunpack.c.h.bf16 %v3117_v51  ;;  %v3983_v58 = vunpack.c.l.bf16 %v3117_v51  ;;  %4062 = vst [vmem:[#allocation20_spill] sm:$0xff] %v3169_v5 }
 0x196   :  { %855 = vmatpush.msra.mxu2 %v3976_v37  ;;  %v3986_v37 = vunpack.c.l.bf16 %v3128_v50 }
 0x197   :  { %922 = vmatpush.msrb.mxu1 %v4059_v30  ;;  %799 = vmatpush.msra.mxu0 %v3977_v27  ;;  %v3145_v30 = vld [vmem:[%s3843_s4 + $0x78] sm:$0xff]  }
 0x198   :  { %856 = vmatpush.msra.mxu2 %v3978_v18  ;;  %4060 = vst [vmem:[#allocation18_spill] sm:$0xff] %v3145_v30  ;;  %v3987_v27 = vunpack.c.h.bf16 %v3145_v30  ;;  %v3155_v18 = vld [vmem:[%s3843_s4 + $0x80] sm:$0xff]  }
 0x199   :  { %923 = vmatpush.msrb.mxu1 %v3979_v53  ;;  %800 = vmatpush.msra.mxu0 %v3982_v55  ;;  %4061 = vst [vmem:[#allocation19_spill] sm:$0xff] %v3155_v18  ;;  %v3988_v53 = vunpack.c.h.bf16 %v3155_v18  ;;  %v3989_v55 = vunpack.c.l.bf16 %v3145_v30 }
 0x19a   :  { %857 = vmatpush.msra.mxu2 %v3983_v58  ;;  %v3992_v58 = vunpack.c.l.bf16 %v3155_v18 }
 0x19b   :  { %924 = vmatpush.msrb.mxu1 %v3986_v37  ;;  %885 = vmatpush.msrb.mxu0 %v3987_v27  ;;  %v3995_v37 = vunpack.c.h.bf16 %v3169_v5  ;;  %v3996_v27 = vunpack.c.l.bf16 %v3169_v5 }
 0x19d   :  { %925 = vmatpush.msrb.mxu1 %v3988_v53  ;;  %886 = vmatpush.msrb.mxu0 %v3989_v55  ;;  %v3182_v53 = vld [vmem:[%s3843_s4 + $0x68] sm:$0xff]  }
 0x19e   :  { %4063 = vst [vmem:[#allocation21_spill] sm:$0xff] %v3182_v53  ;;  %v4003_v55 = vunpack.c.h.bf16 %v3182_v53  ;;  %v4008_v30 = vunpack.c.l.bf16 %v3182_v53 }
 0x19f   :  { %926 = vmatpush.msrb.mxu1 %v3992_v58  ;;  %887 = vmatpush.msrb.mxu0 %v3995_v37  ;;  %v3191_v58 = vld [vmem:[%s3843_s4 + $0x60] sm:$0xff]  }
 0x1a0   :  { %4064 = vst [vmem:[#allocation22_spill] sm:$0xff] %v3191_v58  ;;  %v4013_v37 = vunpack.c.h.bf16 %v3191_v58 }
 0x1a1   :  { %888 = vmatpush.msrb.mxu0 %v3996_v27  ;;  %v4014_v27 = vunpack.c.l.bf16 %v3191_v58 }
 0x1a3   :  { %889 = vmatpush.msrb.mxu0 %v4003_v55 }
 0x1a5   :  { %890 = vmatpush.msrb.mxu0 %v4008_v30 }
 0x1a7   :  { %891 = vmatpush.msrb.mxu0 %v4013_v37 }
 0x1a9   :  { %892 = vmatpush.msrb.mxu0 %v4014_v27 }
 0x1e5   :  { %v728_v11 = vpop.f32.mrf.mxu3 }
 0x1ed   :  { %v731_v10 = vpop.f32.mrf.mxu3 }
 0x1f5   :  { %v734_v54 = vpop.f32.mrf.mxu3 }
 0x1fd   :  { %v763_v5 = vpop.f32.mrf.mxu3 }
 0x1fe   :  { %v772_v18 = vmax.f32 %v728_v11, %v763_v5  ;;  %v4065_v11 = vunpack.c.h.bf16 %v2383_v2 }
 0x200   :  { %1846 = vmatmul.msk.f32.vlgmr.msra.gmra.mxu1 %vm780_vm7, %v772_v18  ;;  %v777_v43 = vrot.slane %v772_v18, 1  ;;  %v835_v30 = vrot.slane %v772_v18, 2 }
 0x205   :  { %v766_v50 = vpop.f32.mrf.mxu3 }
 0x206   :  { %v773_v55 = vmax.f32 %v731_v10, %v766_v50  ;;  %v902_v10 = vrot.slane %v772_v18, 4  ;;  %v4066_v50 = vunpack.c.l.bf16 %v2383_v2 }
 0x208   :  { %1847 = vmatmul.msk.f32.gmra.mxu1 %vm780_vm7, %v773_v55  ;;  %v778_v53 = vrot.slane %v773_v55, 1  ;;  %v836_v26 = vrot.slane %v773_v55, 2  ;;  %v903_v27 = vrot.slane %v773_v55, 4  ;;  %v869_v2 = vrot.slane %v773_v55, 3 }
 0x209   :  { %v4073_v55 = vunpack.c.h.bf16 %v2540_v49 }
 0x20a   :  { %v779_v25 = vsel %vm384_vm0, %v777_v43, %v778_v53  ;;  %v837_v37 = vsel %vm467_vm1, %v835_v30, %v836_v26  ;;  %v904_v14 = vsel %vm568_vm4, %v902_v10, %v903_v27  ;;  %v4067_v43 = vunpack.c.h.bf16 %v2410_v13 }
 0x20b   :  { %1844 = vmatmul.msk.f32.vlgmr.msra.gmra.mxu0 %vm780_vm7, %v779_v25  ;;  %1848 = vmatmul.msk.f32.vlgmr.msra.gmra.mxu2 %vm780_vm7, %v837_v37  ;;  %v4068_v25 = vunpack.c.l.bf16 %v2410_v13  ;;  %v4069_v30 = vunpack.c.h.bf16 %v2449_v24  ;;  %v4071_v13 = vunpack.c.h.bf16 %v2493_v36  ;;  %v4076_v10 = vunpack.c.l.bf16 %v2588_v63 }
 0x20c   :  { %1162 = vmatpush.msra.mxu0 %v4065_v11  ;;  %v868_v11 = vrot.slane %v772_v18, 3 }
 0x20d   :  { %v769_v5 = vpop.f32.mrf.mxu3 }
 0x20e   :  { %1163 = vmatpush.msra.mxu0 %v4066_v50  ;;  %v774_v58 = vmax.f32 %v734_v54, %v769_v5  ;;  %v4070_v54 = vunpack.c.l.bf16 %v2449_v24  ;;  %v870_v5 = vsel %vm517_vm3, %v868_v11, %v869_v2  ;;  %v4078_v50 = vunpack.c.l.bf16 %v2772_v34 }
 0x210   :  { %1852 = vmatmul.msk.f32.vlgmr.msrb.gmra.mxu1 %vm780_vm7, %v904_v14  ;;  %1164 = vmatpush.msra.mxu0 %v4067_v43  ;;  %v905_v37 = vrot.slane %v774_v58, 4  ;;  %v871_v24 = vrot.slane %v774_v58, 3  ;;  %v4079_v58 = vunpack.c.h.bf16 %v2791_v48  ;;  %v4081_v43 = vunpack.c.h.bf16 %v2812_v47 }
 0x212   :  { %1165 = vmatpush.msra.mxu0 %v4068_v25  ;;  %v906_v14 = vsel %vm568_vm4, %v903_v27, %v905_v37  ;;  %v4075_v27 = vunpack.c.h.bf16 %v2588_v63  ;;  %v872_v18 = vsel %vm517_vm3, %v869_v2, %v871_v24  ;;  %v4082_v63 = vunpack.c.l.bf16 %v2812_v47 }
 0x213   :  { %1845 = vmatmul.msk.f32.gmra.mxu0 %vm780_vm7, %v778_v53  ;;  %1849 = vmatmul.msk.f32.gmra.mxu2 %vm780_vm7, %v836_v26  ;;  %v4072_v53 = vunpack.c.l.bf16 %v2493_v36  ;;  %v4074_v26 = vunpack.c.l.bf16 %v2540_v49  ;;  %v4077_v36 = vunpack.c.h.bf16 %v2772_v34  ;;  %v4080_v49 = vunpack.c.l.bf16 %v2791_v48 }
 0x214   :  { %1166 = vmatpush.msra.mxu0 %v4069_v30  ;;  %v4083_v25 = vunpack.c.h.bf16 %v2835_v16  ;;  %v4084_v37 = vunpack.c.l.bf16 %v2835_v16  ;;  %v4085_v34 = vunpack.c.h.bf16 %v2856_v6  ;;  %v4086_v30 = vunpack.c.l.bf16 %v2856_v6  ;;  %v3276_v6 = vld [vmem:[%s3844_s5 + $0x30] sm:$0xff]  }
 0x215   :  { %v4087_v48 = vunpack.c.h.bf16 %v2879_v17  ;;  %v4088_v2 = vunpack.c.l.bf16 %v2879_v17  ;;  %v4089_v47 = vunpack.c.h.bf16 %v2900_v35  ;;  %v4091_v16 = vunpack.c.h.bf16 %v2767_v12 }
 0x216   :  { %1167 = vmatpush.msra.mxu0 %v4070_v54  ;;  %v4090_v54 = vunpack.c.l.bf16 %v2900_v35  ;;  %v4029_v17 = vunpack.c.h.bf16 %v3276_v6  ;;  %v4027_v35 = vunpack.c.l.bf16 %v3276_v6 }
 0x218   :  { %1853 = vmatmul.msk.f32.gmra.mxu1 %vm780_vm7, %v906_v14  ;;  %1168 = vmatpush.msra.mxu0 %v4071_v13  ;;  %v3281_v14 = vld [vmem:[%s3844_s5 + $0x68] sm:$0xff]  }
 0x219   :  { %v2237_v11 = vunpack.c.h.bf16 %v3281_v14  ;;  %947 = vmatpush.msrb.mxu3 %v4029_v17  ;;  %v2236_v13 = vunpack.c.l.bf16 %v3281_v14 }
 0x21a   :  { %1169 = vmatpush.msra.mxu0 %v4072_v53  ;;  %v3299_v53 = vld [vmem:[%s3844_s5 + $0x60] sm:$0xff]  }
 0x21b   :  { %1850 = vmatmul.msk.f32.vlgmr.msrb.gmra.mxu0 %vm780_vm7, %v870_v5  ;;  %970 = vmatpush.msrb.mxu2 %v2237_v11  ;;  %v3294_v5 = vld [vmem:[%s3844_s5 + $0x28] sm:$0xff]   ;;  %v2233_v24 = vunpack.c.h.bf16 %v3299_v53 }
 0x21c   :  { %1170 = vmatpush.msra.mxu0 %v4073_v55  ;;  %948 = vmatpush.msrb.mxu3 %v4027_v35  ;;  %v4025_v55 = vunpack.c.h.bf16 %v3294_v5  ;;  %v3409_v35 = vld [vmem:[%s3844_s5 + $0x38] sm:$0xff]  }
 0x21d   :  { %971 = vmatpush.msrb.mxu2 %v2236_v13  ;;  %v4035_v17 = vunpack.c.h.bf16 %v3409_v35 }
 0x21e   :  { %1171 = vmatpush.msra.mxu0 %v4074_v26  ;;  %949 = vmatpush.msrb.mxu3 %v4025_v55  ;;  %v4024_v26 = vunpack.c.l.bf16 %v3294_v5 }
 0x21f   :  { %972 = vmatpush.msrb.mxu2 %v2233_v24 }
 0x220   :  { %1172 = vmatpush.msra.mxu0 %v4075_v27  ;;  %v2232_v27 = vunpack.c.l.bf16 %v3299_v53  ;;  %950 = vmatpush.msrb.mxu3 %v4024_v26 }
 0x222   :  { %1173 = vmatpush.msra.mxu0 %v4076_v10  ;;  %v3321_v10 = vld [vmem:[%s3844_s5 + $0x58] sm:$0xff]   ;;  %973 = vmatpush.msrb.mxu2 %v2232_v27 }
 0x223   :  { %1851 = vmatmul.msk.f32.gmra.mxu0 %vm780_vm7, %v872_v18  ;;  %v3316_v18 = vld [vmem:[%s3844_s5 + $0x20] sm:$0xff]  }
 0x224   :  { %1338 = vmatpush.msrb.mxu0 %v4077_v36  ;;  %v4023_v36 = vunpack.c.h.bf16 %v3316_v18 }
 0x226   :  { %1339 = vmatpush.msrb.mxu0 %v4078_v50  ;;  %v2229_v50 = vunpack.c.h.bf16 %v3321_v10  ;;  %951 = vmatpush.msrb.mxu3 %v4023_v36 }
 0x228   :  { %1340 = vmatpush.msrb.mxu0 %v4079_v58  ;;  %974 = vmatpush.msrb.mxu2 %v2229_v50  ;;  %v4020_v58 = vunpack.c.l.bf16 %v3316_v18 }
 0x22a   :  { %1341 = vmatpush.msrb.mxu0 %v4080_v49  ;;  %v2228_v49 = vunpack.c.l.bf16 %v3321_v10  ;;  %952 = vmatpush.msrb.mxu3 %v4020_v58  ;;  %v3382_v58 = vld [vmem:[%s3844_s5 + $0x8] sm:$0xff]  }
 0x22b   :  { %v4032_v26 = vunpack.c.l.bf16 %v3382_v58 }
 0x22c   :  { %1342 = vmatpush.msrb.mxu0 %v4081_v43  ;;  %v3338_v43 = vld [vmem:[%s3844_s5 + $0x18] sm:$0xff]   ;;  %975 = vmatpush.msrb.mxu2 %v2228_v49 }
 0x22e   :  { %1343 = vmatpush.msrb.mxu0 %v4082_v63  ;;  %v3343_v63 = vld [vmem:[%s3844_s5 + $0x50] sm:$0xff]  }
 0x230   :  { %1344 = vmatpush.msrb.mxu0 %v4083_v25  ;;  %v4019_v25 = vunpack.c.h.bf16 %v3338_v43 }
 0x232   :  { %1345 = vmatpush.msrb.mxu0 %v4084_v37  ;;  %v2225_v37 = vunpack.c.h.bf16 %v3343_v63  ;;  %953 = vmatpush.msrb.mxu3 %v4019_v25 }
 0x234   :  { %1346 = vmatpush.msrb.mxu0 %v4085_v34  ;;  %976 = vmatpush.msrb.mxu2 %v2225_v37  ;;  %v4021_v34 = vunpack.c.l.bf16 %v3338_v43 }
 0x236   :  { %1347 = vmatpush.msrb.mxu0 %v4086_v30  ;;  %v4037_v30 = vunpack.c.l.bf16 %v3343_v63  ;;  %954 = vmatpush.msrb.mxu3 %v4021_v34  ;;  %v3387_v34 = vld [vmem:[%s3844_s5 + $0x40] sm:$0xff]  }
 0x237   :  { %v4030_v36 = vunpack.c.h.bf16 %v3387_v34  ;;  %v4033_v55 = vunpack.c.l.bf16 %v3387_v34 }
 0x238   :  { %1348 = vmatpush.msrb.mxu0 %v4087_v48  ;;  %v3360_v48 = vld [vmem:[%s3844_s5 + $0x10] sm:$0xff]   ;;  %977 = vmatpush.msrb.mxu2 %v4037_v30  ;;  %v4096_v30 = vunpack.c.h.bf16 %v2397_v8 }
 0x23a   :  { %1349 = vmatpush.msrb.mxu0 %v4088_v2  ;;  %v3365_v2 = vld [vmem:[%s3844_s5 + $0x48] sm:$0xff]  }
 0x23b   :  { %v4031_v25 = vunpack.c.l.bf16 %v3365_v2 }
 0x23c   :  { %1350 = vmatpush.msrb.mxu0 %v4089_v47  ;;  %v4022_v47 = vunpack.c.h.bf16 %v3360_v48 }
 0x23e   :  { %1351 = vmatpush.msrb.mxu0 %v4090_v54  ;;  %v4036_v54 = vunpack.c.h.bf16 %v3365_v2  ;;  %955 = vmatpush.msrb.mxu3 %v4022_v47  ;;  %v4028_v47 = vunpack.c.h.bf16 %v3382_v58 }
 0x240   :  { %1352 = vmatpush.msrb.mxu0 %v4091_v16  ;;  %978 = vmatpush.msrb.mxu2 %v4036_v54  ;;  %v4026_v16 = vunpack.c.l.bf16 %v3360_v48 }
 0x242   :  { %956 = vmatpush.msrb.mxu3 %v4026_v16  ;;  %979 = vmatpush.msrb.mxu2 %v4031_v25  ;;  %v3404_v16 = vld [vmem:[%s3844_s5] sm:$0xff]   ;;  %v4039_v25 = vunpack.c.l.bf16 %v3409_v35 }
 0x244   :  { %957 = vmatpush.msrb.mxu3 %v4028_v47  ;;  %980 = vmatpush.msrb.mxu2 %v4030_v36  ;;  %v4034_v47 = vunpack.c.h.bf16 %v3404_v16  ;;  %v4038_v36 = vunpack.c.l.bf16 %v3404_v16 }
 0x246   :  { %958 = vmatpush.msrb.mxu3 %v4032_v26  ;;  %981 = vmatpush.msrb.mxu2 %v4033_v55  ;;  %v4092_v26 = vunpack.c.h.bf16 %v2373_v0  ;;  %v4093_v55 = vunpack.c.h.bf16 %v2378_v1 }
 0x248   :  { %959 = vmatpush.msrb.mxu3 %v4034_v47  ;;  %982 = vmatpush.msrb.mxu2 %v4035_v17  ;;  %v4094_v47 = vunpack.c.l.bf16 %v2373_v0  ;;  %v4095_v17 = vunpack.c.l.bf16 %v2378_v1  ;;  %v4100_v0 = vunpack.c.h.bf16 %v2433_v20  ;;  %v4101_v1 = vunpack.c.h.bf16 %v2438_v21 }
 0x24a   :  { %960 = vmatpush.msrb.mxu3 %v4038_v36  ;;  %983 = vmatpush.msrb.mxu2 %v4039_v25  ;;  %v4097_v36 = vunpack.c.h.bf16 %v2402_v9  ;;  %v4098_v25 = vunpack.c.l.bf16 %v2397_v8  ;;  %v4105_v8 = vunpack.c.h.bf16 %v2482_v33 }
 0x24c   :  { %1081 = vmatpush.msra.mxu3 %v4092_v26  ;;  %1118 = vmatpush.msra.mxu2 %v4093_v55  ;;  %v4099_v26 = vunpack.c.l.bf16 %v2402_v9 }
 0x24e   :  { %1082 = vmatpush.msra.mxu3 %v4094_v47  ;;  %1119 = vmatpush.msra.mxu2 %v4095_v17  ;;  %v4102_v17 = vunpack.c.l.bf16 %v2433_v20  ;;  %v4107_v47 = vunpack.c.l.bf16 %v2482_v33  ;;  %v4108_v20 = vunpack.c.h.bf16 %v2521_v44  ;;  %v4113_v33 = vunpack.c.h.bf16 %v2577_v60 }
 0x250   :  { %1083 = vmatpush.msra.mxu3 %v4096_v30  ;;  %1120 = vmatpush.msra.mxu2 %v4097_v36  ;;  %v4103_v30 = vunpack.c.l.bf16 %v2438_v21  ;;  %v4104_v36 = vunpack.c.h.bf16 %v2477_v32  ;;  %v4109_v21 = vunpack.c.h.bf16 %v2526_v45 }
 0x252   :  { %1084 = vmatpush.msra.mxu3 %v4098_v25  ;;  %1121 = vmatpush.msra.mxu2 %v4099_v26  ;;  %v4106_v25 = vunpack.c.l.bf16 %v2477_v32  ;;  %v4112_v32 = vunpack.c.h.bf16 %v2572_v59 }
 0x254   :  { %1085 = vmatpush.msra.mxu3 %v4100_v0  ;;  %1122 = vmatpush.msra.mxu2 %v4101_v1  ;;  %v4110_v1 = vunpack.c.l.bf16 %v2521_v44 }
 0x256   :  { %1086 = vmatpush.msra.mxu3 %v4102_v17  ;;  %1123 = vmatpush.msra.mxu2 %v4103_v30  ;;  %v4111_v17 = vunpack.c.l.bf16 %v2526_v45 }
 0x258   :  { %1087 = vmatpush.msra.mxu3 %v4104_v36  ;;  %1124 = vmatpush.msra.mxu2 %v4105_v8  ;;  %v4114_v36 = vunpack.c.l.bf16 %v2572_v59  ;;  %v4115_v8 = vunpack.c.l.bf16 %v2577_v60  ;;  %v4116_v59 = vunpack.c.h.bf16 %v2629_v41  ;;  %v4117_v60 = vunpack.c.l.bf16 %v2767_v12 }
 0x259   :  { %v4123_v12 = vunpack.c.h.bf16 %v2801_v28 }
 0x25a   :  { %1088 = vmatpush.msra.mxu3 %v4106_v25  ;;  %1125 = vmatpush.msra.mxu2 %v4107_v47 }
 0x25c   :  { %1089 = vmatpush.msra.mxu3 %v4108_v20  ;;  %1126 = vmatpush.msra.mxu2 %v4109_v21 }
 0x25e   :  { %1090 = vmatpush.msra.mxu3 %v4110_v1  ;;  %1127 = vmatpush.msra.mxu2 %v4111_v17 }
 0x260   :  { %1091 = vmatpush.msra.mxu3 %v4112_v32  ;;  %1128 = vmatpush.msra.mxu2 %v4113_v33  ;;  %v4118_v33 = vunpack.c.l.bf16 %v2629_v41  ;;  %v4124_v41 = vunpack.c.h.bf16 %v2684_v29 }
 0x262   :  { %1092 = vmatpush.msra.mxu3 %v4114_v36  ;;  %1129 = vmatpush.msra.mxu2 %v4115_v8  ;;  %v4121_v36 = vunpack.c.l.bf16 %v2779_v22 }
 0x27d   :  { %v829_v54 = vpop.f32.mrf.mxu1 }
 0x285   :  { %v832_v9 = vpop.f32.mrf.mxu1 }
 0x288   :  { %v802_v55 = vpop.f32.mrf.mxu0 }
 0x289   :  { %v830_v30 = vadd.f32 %v829_v54, %v802_v55 }
 0x28d   :  { %v928_v47 = vpop.f32.mrf.mxu1 }
 0x28e   :  { %v859_v0 = vpop.f32.mrf.mxu2 }
 0x28f   :  { %v865_v25 = vadd.f32 %v859_v0, %v830_v30  ;;  %v4120_v30 = vunpack.c.h.bf16 %v2659_v19 }
 0x290   :  { %v805_v26 = vpop.f32.mrf.mxu0 }
 0x291   :  { %v833_v1 = vadd.f32 %v832_v9, %v805_v26  ;;  %v4119_v9 = vunpack.c.h.bf16 %v2779_v22  ;;  %v4126_v22 = vunpack.c.l.bf16 %v2684_v29  ;;  %v4133_v29 = vunpack.c.l.bf16 %v2845_v15 }
 0x295   :  { %v931_v0 = vpop.f32.mrf.mxu1 }
 0x296   :  { %v862_v45 = vpop.f32.mrf.mxu2 }
 0x297   :  { %v866_v32 = vadd.f32 %v862_v45, %v833_v1  ;;  %v4131_v45 = vunpack.c.h.bf16 %v2845_v15  ;;  %v4134_v1 = vunpack.c.l.bf16 %v2718_v23  ;;  %v4140_v15 = vunpack.c.l.bf16 %v2889_v4 }
 0x298   :  { %v894_v44 = vpop.f32.mrf.mxu0 }
 0x299   :  { %v900_v20 = vadd.f32 %v894_v44, %v865_v25  ;;  %v4122_v25 = vunpack.c.l.bf16 %v2659_v19  ;;  %v4127_v44 = vunpack.c.h.bf16 %v2823_v56  ;;  %v4128_v19 = vunpack.c.h.bf16 %v2703_v40 }
 0x29b   :  { %v934_v21 = vadd.f32 %v928_v47, %v900_v20  ;;  %v4125_v47 = vunpack.c.l.bf16 %v2801_v28  ;;  %v4129_v20 = vunpack.c.l.bf16 %v2823_v56  ;;  %v4132_v28 = vunpack.c.h.bf16 %v2718_v23 }
 0x29c   :  { %v4136_v56 = vunpack.c.h.bf16 %v2735_v62  ;;  %v4141_v23 = vunpack.c.h.bf16 %v2911_v39 }
 0x29d   :  { %v936_v17 = vmax.f32 %v934_v21, 0.0  ;;  %v4130_v21 = vunpack.c.l.bf16 %v2703_v40  ;;  %v4137_v40 = vunpack.c.l.bf16 %v2867_v3 }
 0x29f   :  { %1854 = vmatmul.msk.f32.vlgmr.msrb.gmra.mxu3 %vm938_vm8, %v936_v17  ;;  %1856 = vmatmul.msk.f32.vlgmr.msrb.gmra.mxu2 %vm938_vm8, %v936_v17  ;;  %v4135_v17 = vunpack.c.h.bf16 %v2867_v3  ;;  %v1862_v3 = vld [vmem:[%s3840_s0 + $0x14] sm:$0xf] }
 0x2a0   :  { %v897_v54 = vpop.f32.mrf.mxu0  ;;  %1263 = vmatpush.msrb.mxu3 %v4116_v59  ;;  %1309 = vmatpush.msrb.mxu2 %v4117_v60  ;;  %v4142_v59 = vunpack.c.l.bf16 %v2911_v39 }
 0x2a1   :  { %v901_v55 = vadd.f32 %v897_v54, %v866_v32  ;;  %v4138_v32 = vunpack.c.l.bf16 %v2735_v62  ;;  %v4139_v54 = vunpack.c.h.bf16 %v2889_v4  ;;  %v2329_v62 = vld [vmem:[%s3840_s0 + $0x18] sm:$0xff]  }
 0x2a2   :  { %1264 = vmatpush.msrb.mxu3 %v4118_v33  ;;  %1310 = vmatpush.msrb.mxu2 %v4119_v9  ;;  %v3539_v60 = vunpack.c.l.bf16 %v2329_v62  ;;  %v4143_v33 = vunpack.c.h.bf16 %v2986_v46  ;;  %v4144_v9 = vunpack.c.l.bf16 %v2986_v46 }
 0x2a3   :  { %v935_v26 = vadd.f32 %v931_v0, %v901_v55  ;;  %v1053_v55 = vunpack.c.l.bf16 %v1862_v3 }
 0x2a4   :  { %1265 = vmatpush.msrb.mxu3 %v4120_v30  ;;  %1311 = vmatpush.msrb.mxu2 %v4121_v36  ;;  %v1063_v4 = vrot.slane %v3539_v60, 1  ;;  %v3551_v30 = vunpack.c.h.bf16 %v2329_v62  ;;  %v4146_v36 = vunpack.c.l.bf16 %v2997_v57 }
 0x2a5   :  { %v937_v8 = vmax.f32 %v935_v26, 0.0  ;;  %v1062_v0 = vrot.slane %v1053_v55, 1  ;;  %v4145_v26 = vunpack.c.h.bf16 %v2997_v57  ;;  %v4148_v57 = vunpack.c.l.bf16 %v3004_v52 }
 0x2a6   :  { %1266 = vmatpush.msrb.mxu3 %v4122_v25  ;;  %1312 = vmatpush.msrb.mxu2 %v4123_v12  ;;  %v1143_v25 = vrot.slane %v1053_v55, 2  ;;  %v1144_v12 = vrot.slane %v3539_v60, 2  ;;  %v1192_v62 = vrot.slane %v1053_v55, 3 }
 0x2a7   :  { %1855 = vmatmul.msk.f32.gmra.mxu3 %vm938_vm8, %v937_v8  ;;  %1857 = vmatmul.msk.f32.gmra.mxu2 %vm938_vm8, %v937_v8  ;;  %v1064_v39 = vsel %vm384_vm0, %v1062_v0, %v1063_v4  ;;  %v1065_v8 = vrot.slane %v3551_v30, 1  ;;  %v1193_v0 = vrot.slane %v3539_v60, 3 }
 0x2a8   :  { %1267 = vmatpush.msrb.mxu3 %v4124_v41  ;;  %1313 = vmatpush.msrb.mxu2 %v4125_v47  ;;  %v4147_v41 = vunpack.c.h.bf16 %v3004_v52  ;;  %v1145_v47 = vsel %vm467_vm1, %v1143_v25, %v1144_v12  ;;  %v1146_v52 = vrot.slane %v3551_v30, 2 }
 0x2a9   :  { %v1066_v46 = vsel %vm384_vm0, %v1063_v4, %v1065_v8  ;;  %1875 = vmatmul.msk.f32.vlgmr.msra.gmra.mxu0 %vm392_vm2, %v1145_v47 }
 0x2aa   :  { %1268 = vmatpush.msrb.mxu3 %v4126_v22  ;;  %1314 = vmatpush.msrb.mxu2 %v4127_v44  ;;  %v4149_v22 = vunpack.c.h.bf16 %v3014_v42  ;;  %v1865_v44 = vld [vmem:[%s3840_s0 + $0x20] sm:$0xf] }
 0x2ac   :  { %1269 = vmatpush.msrb.mxu3 %v4128_v19  ;;  %1315 = vmatpush.msrb.mxu2 %v4129_v20  ;;  %v3572_v19 = vunpack.c.l.bf16 %v1865_v44  ;;  %v4150_v20 = vunpack.c.h.bf16 %v3033_v61  ;;  %v4161_v44 = vld [vmem:[#allocation2_spill] sm:$0xff] }
 0x2ad   :  { %1502 = vmatpush.msra.mxu0 %v4149_v22  ;;  %v4160_v22 = vunpack.c.l.bf16 %v2392_v7 }
 0x2ae   :  { %1270 = vmatpush.msrb.mxu3 %v4130_v21  ;;  %1316 = vmatpush.msrb.mxu2 %v4131_v45  ;;  %v4151_v21 = vunpack.c.l.bf16 %v3014_v42  ;;  %v1067_v45 = vrot.slane %v3572_v19, 1  ;;  %v4154_v42 = vunpack.c.l.bf16 %v3051_v38 }
 0x2af   :  { %1871 = vmatmul.msk.f32.vlgmr.msra.gmra.mxu2 %vm392_vm2, %v1053_v55  ;;  %1867 = vmatmul.msk.f32.vlgmr.msra.gmra.mxu3 %vm392_vm2, %v1064_v39  ;;  %v1194_v39 = vsel %vm517_vm3, %v1192_v62, %v1193_v0 }
 0x2b0   :  { %1271 = vmatpush.msrb.mxu3 %v4132_v28  ;;  %1317 = vmatpush.msrb.mxu2 %v4133_v29  ;;  %v4152_v28 = vunpack.c.h.bf16 %v3051_v38  ;;  %v4153_v29 = vunpack.c.l.bf16 %v3033_v61  ;;  %v1148_v61 = vrot.slane %v3572_v19, 2 }
 0x2b1   :  { %1503 = vmatpush.msra.mxu0 %v4151_v21  ;;  %v4163_v21 = vunpack.c.l.bf16 %v4161_v44 }
 0x2b2   :  { %1272 = vmatpush.msrb.mxu3 %v4134_v1  ;;  %1318 = vmatpush.msrb.mxu2 %v4135_v17  ;;  %v1068_v1 = vsel %vm384_vm0, %v1065_v8, %v1067_v45  ;;  %v1147_v17 = vsel %vm467_vm1, %v1144_v12, %v1146_v52  ;;  %v1149_v38 = vsel %vm467_vm1, %v1146_v52, %v1148_v61  ;;  %v1197_v12 = vrot.slane %v3572_v19, 3  ;;  %v4164_v52 = vld [vmem:[#allocation3_spill] sm:$0xff] }
 0x2b3   :  { %1504 = vmatpush.msra.mxu0 %v4152_v28 }
 0x2b4   :  { %1273 = vmatpush.msrb.mxu3 %v4136_v56  ;;  %1319 = vmatpush.msrb.mxu2 %v4137_v40  ;;  %v4155_v56 = vunpack.c.h.bf16 %v3078_v31  ;;  %v4156_v40 = vunpack.c.l.bf16 %v3078_v31 }
 0x2b5   :  { %1505 = vmatpush.msra.mxu0 %v4154_v42 }
 0x2b6   :  { %1274 = vmatpush.msrb.mxu3 %v4138_v32  ;;  %1320 = vmatpush.msrb.mxu2 %v4139_v54  ;;  %v4157_v32 = vunpack.c.h.bf16 %v3117_v51  ;;  %v4158_v54 = vunpack.c.l.bf16 %v3117_v51  ;;  %v3614_v51 = vld [vmem:[%s3845_s6] sm:$0xff]  }
 0x2b7   :  { %1872 = vmatmul.msk.f32.gmra.mxu2 %vm392_vm2, %v3539_v60  ;;  %1868 = vmatmul.msk.f32.gmra.mxu3 %vm392_vm2, %v1066_v46  ;;  %v2240_v8 = vunpack.c.l.bf16 %v3614_v51  ;;  %v2241_v46 = vunpack.c.h.bf16 %v3614_v51 }
 0x2b8   :  { %1321 = vmatpush.msrb.mxu2 %v4140_v15  ;;  %1876 = vmatmul.msk.f32.gmra.mxu0 %vm392_vm2, %v1147_v17  ;;  %v4167_v17 = vld [vmem:[#allocation4_spill] sm:$0xff] }
 0x2b9   :  { %1506 = vmatpush.msra.mxu0 %v4155_v56  ;;  %v4168_v42 = vunpack.c.h.bf16 %v4167_v17  ;;  %v4169_v56 = vunpack.c.l.bf16 %v4167_v17 }
 0x2ba   :  { %1322 = vmatpush.msrb.mxu2 %v4141_v23  ;;  %v1242_v23 = vrot.slane %v1053_v55, 4 }
 0x2bb   :  { %1507 = vmatpush.msra.mxu0 %v4156_v40  ;;  %v4170_v40 = vld [vmem:[#allocation5_spill] sm:$0xff] }
 0x2bc   :  { %1323 = vmatpush.msrb.mxu2 %v4142_v59  ;;  %v1243_v59 = vrot.slane %v3539_v60, 4 }
 0x2bd   :  { %1508 = vmatpush.msra.mxu0 %v4157_v32  ;;  %v4172_v32 = vunpack.c.l.bf16 %v4170_v40 }
 0x2be   :  { %1472 = vmatpush.msra.mxu2 %v4143_v33  ;;  %v1244_v3 = vsel %vm568_vm4, %v1242_v23, %v1243_v59 }
 0x2bf   :  { %1873 = vmatmul.msk.f32.gmra.mxu2 %vm392_vm2, %v3551_v30  ;;  %1869 = vmatmul.msk.f32.gmra.mxu3 %vm392_vm2, %v1068_v1 }
 0x2c0   :  { %1473 = vmatpush.msra.mxu2 %v4144_v9  ;;  %1509 = vmatpush.msra.mxu0 %v4158_v54 }
 0x2c1   :  { %1877 = vmatmul.msk.f32.gmra.mxu0 %vm392_vm2, %v1149_v38  ;;  %v4173_v38 = vld [vmem:[#allocation6_spill] sm:$0xff] }
 0x2c2   :  { %1474 = vmatpush.msra.mxu2 %v4145_v26  ;;  %v1245_v26 = vrot.slane %v3551_v30, 4  ;;  %v4174_v54 = vunpack.c.h.bf16 %v4173_v38 }
 0x2c4   :  { %1475 = vmatpush.msra.mxu2 %v4146_v36  ;;  %v1195_v36 = vrot.slane %v3551_v30, 3  ;;  %v1246_v60 = vsel %vm568_vm4, %v1243_v59, %v1245_v26  ;;  %v1247_v30 = vrot.slane %v3572_v19, 4 }
 0x2c6   :  { %1476 = vmatpush.msra.mxu2 %v4147_v41  ;;  %v1196_v55 = vsel %vm517_vm3, %v1193_v0, %v1195_v36  ;;  %v4159_v41 = vunpack.c.h.bf16 %v2392_v7  ;;  %v1248_v47 = vsel %vm568_vm4, %v1245_v26, %v1247_v30  ;;  %v4165_v7 = vunpack.c.h.bf16 %v4164_v52 }
 0x2c7   :  { %1874 = vmatmul.msk.f32.gmra.mxu2 %vm392_vm2, %v3572_v19  ;;  %1870 = vmatmul.msk.f32.gmra.mxu3 %vm392_vm2, %v1067_v45  ;;  %v1866_v19 = vld [vmem:[%s3840_s0 + $0x24] sm:$0x1] }
 0x2c8   :  { %1477 = vmatpush.msra.mxu2 %v4148_v57  ;;  %v1198_v57 = vsel %vm517_vm3, %v1195_v36, %v1197_v12  ;;  %v1057_v45 = vunpack.c.l.bf16 %v1866_v19 }
 0x2c9   :  { %1878 = vmatmul.msk.f32.gmra.mxu0 %vm392_vm2, %v1148_v61  ;;  %v4171_v61 = vunpack.c.h.bf16 %v4170_v40 }
 0x2ca   :  { %1478 = vmatpush.msra.mxu2 %v4150_v20  ;;  %v4162_v20 = vunpack.c.h.bf16 %v4161_v44  ;;  %v1249_v28 = vrot.slane %v1057_v45, 4 }
 0x2cc   :  { %1479 = vmatpush.msra.mxu2 %v4153_v29  ;;  %v4166_v29 = vunpack.c.l.bf16 %v4164_v52  ;;  %v1250_v1 = vsel %vm568_vm4, %v1247_v30, %v1249_v28  ;;  %v4176_v52 = vld [vmem:[#allocation13_spill] sm:$0xff] }
 0x2cf   :  { %1883 = vmatmul.msk.f32.vlgmr.msrb.gmra.mxu3 %vm392_vm2, %v1244_v3 }
 0x2d7   :  { %1884 = vmatmul.msk.f32.gmra.mxu3 %vm392_vm2, %v1246_v60 }
 0x2df   :  { %1885 = vmatmul.msk.f32.gmra.mxu3 %vm392_vm2, %v1248_v47 }
 0x2e7   :  { %1886 = vmatmul.msk.f32.gmra.mxu3 %vm392_vm2, %v1250_v1  ;;  %v4178_v1 = vunpack.c.l.bf16 %v4176_v52 }
 0x322   :  { %v962_v15 = vpop.f32.mrf.mxu3  ;;  %v985_v31 = vpop.f32.mrf.mxu2 }
 0x323   :  { %v991_v25 = vmax.f32 %v962_v15, %v985_v31  ;;  %v4175_v15 = vunpack.c.l.bf16 %v4173_v38  ;;  %v1199_v31 = vrot.slane %v1057_v45, 3 }
 0x325   :  { %v1200_v23 = vsel %vm517_vm3, %v1197_v12, %v1199_v31 }
 0x32a   :  { %v965_v4 = vpop.f32.mrf.mxu3  ;;  %v988_v33 = vpop.f32.mrf.mxu2 }
 0x32b   :  { %v992_v9 = vmax.f32 %v965_v4, %v988_v33 }
 0x32d   :  { %1858 = vmatpush.msk.msra.mxu1 %vm467_vm1, %v992_v9 }
 0x32f   :  { %1015 = vmatpush.msra.mxu1 %v991_v25 }
 0x330   :  { %1859 = vmatmul.msk.f32.vlgmr.msra.gmra.mxu1 %vm993_vm9, %v2240_v8 }
 0x331   :  { %1860 = vmatpush.msk.msrb.mxu1 %vm467_vm1, %v992_v9 }
 0x332   :  { %v1094_v59 = vpop.f32.mrf.mxu3  ;;  %v1131_v36 = vpop.f32.mrf.mxu2 }
 0x333   :  { %1038 = vmatpush.msrb.mxu1 %v991_v25  ;;  %v1132_v60 = vadd.f32 %v1131_v36, %v1094_v59  ;;  %v4185_v59 = vld [vmem:[#allocation19_spill] sm:$0xff]  ;;  %v4191_v36 = vunpack.c.h.bf16 %v3387_v34 }
 0x335   :  { %1213 = vmatpush.msra.mxu1 %v4159_v41 }
 0x337   :  { %1214 = vmatpush.msra.mxu1 %v4160_v22 }
 0x338   :  { %1861 = vmatmul.msk.f32.vlgmr.msrb.gmra.mxu1 %vm993_vm9, %v2241_v46 }
 0x339   :  { %1215 = vmatpush.msra.mxu1 %v4162_v20 }
 0x33a   :  { %v1097_v3 = vpop.f32.mrf.mxu3 }
 0x33b   :  { %1216 = vmatpush.msra.mxu1 %v4163_v21 }
 0x33d   :  { %1217 = vmatpush.msra.mxu1 %v4165_v7  ;;  %v4177_v7 = vunpack.c.h.bf16 %v4176_v52 }
 0x33f   :  { %1218 = vmatpush.msra.mxu1 %v4166_v29 }
 0x341   :  { %1219 = vmatpush.msra.mxu1 %v4168_v42 }
 0x342   :  { %v1100_v0 = vpop.f32.mrf.mxu3 }
 0x343   :  { %1220 = vmatpush.msra.mxu1 %v4169_v56  ;;  %v4179_v56 = vld [vmem:[#allocation15_spill] sm:$0xff] }
 0x344   :  { %v4180_v40 = vunpack.c.h.bf16 %v4179_v56 }
 0x345   :  { %1221 = vmatpush.msra.mxu1 %v4171_v61 }
 0x347   :  { %1222 = vmatpush.msra.mxu1 %v4172_v32 }
 0x349   :  { %1223 = vmatpush.msra.mxu1 %v4174_v54  ;;  %v4182_v54 = vld [vmem:[#allocation17_spill] sm:$0xff] }
 0x34a   :  { %v1103_v9 = vpop.f32.mrf.mxu3  ;;  %v4184_v31 = vunpack.c.l.bf16 %v4182_v54 }
 0x34b   :  { %1224 = vmatpush.msra.mxu1 %v4175_v15  ;;  %v4183_v15 = vunpack.c.h.bf16 %v4182_v54 }
 0x34c   :  { %1879 = vmatmul.msk.f32.vlgmr.msra.gmra.mxu1 %vm392_vm2, %v1194_v39  ;;  %v1175_v39 = vpop.f32.mrf.mxu0 }
 0x34d   :  { %v1187_v30 = vadd.f32 %v1175_v39, %v1132_v60  ;;  %v4192_v39 = vunpack.c.l.bf16 %v3387_v34  ;;  %v4194_v60 = vunpack.c.l.bf16 %v3409_v35 }
 0x352   :  { %v1276_v25 = vpop.f32.mrf.mxu3 }
 0x354   :  { %1880 = vmatmul.msk.f32.gmra.mxu1 %vm392_vm2, %v1196_v55  ;;  %v1134_v55 = vpop.f32.mrf.mxu2  ;;  %v1178_v12 = vpop.f32.mrf.mxu0 }
 0x35a   :  { %v1279_v44 = vpop.f32.mrf.mxu3 }
 0x35c   :  { %1881 = vmatmul.msk.f32.gmra.mxu1 %vm392_vm2, %v1198_v57  ;;  %v1135_v57 = vadd.f32 %v1134_v55, %v1097_v3  ;;  %v1137_v19 = vpop.f32.mrf.mxu2  ;;  %v1181_v29 = vpop.f32.mrf.mxu0  ;;  %v4186_v3 = vunpack.c.h.bf16 %v4185_v59 }
 0x35d   :  { %v1138_v17 = vadd.f32 %v1137_v19, %v1100_v0  ;;  %v4187_v0 = vunpack.c.l.bf16 %v4185_v59 }
 0x35e   :  { %v1188_v21 = vadd.f32 %v1178_v12, %v1135_v57 }
 0x35f   :  { %v1189_v38 = vadd.f32 %v1181_v29, %v1138_v17  ;;  %v4201_v29 = vunpack.c.h.bf16 %v3276_v6  ;;  %v4203_v17 = vunpack.c.l.bf16 %v3276_v6  ;;  %v4211_v6 = vld [vmem:[#allocation14_spill] sm:$0xff] }
 0x360   :  { %v4214_v54 = vunpack.c.l.bf16 %v4211_v6 }
 0x362   :  { %v1282_v32 = vpop.f32.mrf.mxu3 }
 0x364   :  { %1882 = vmatmul.msk.f32.gmra.mxu1 %vm392_vm2, %v1200_v23  ;;  %v1140_v14 = vpop.f32.mrf.mxu2  ;;  %v1184_v23 = vpop.f32.mrf.mxu0 }
 0x365   :  { %v1141_v53 = vadd.f32 %v1140_v14, %v1103_v9  ;;  %v4212_v14 = vunpack.c.h.bf16 %v4211_v6 }
 0x3ad   :  { %v1017_v62 = vpop.f32.mrf.mxu1 }
 0x3b5   :  { %v1040_v4 = vpop.f32.mrf.mxu1 }
 0x3b6   :  { %v1043_v33 = vmax.f32 %v1017_v62, %v1040_v4  ;;  %v1190_v4 = vadd.f32 %v1184_v23, %v1141_v53  ;;  %v4221_v23 = vld [vmem:[#allocation10_spill] sm:$0xff] }
 0x3b7   :  { %v4222_v59 = vunpack.c.l.bf16 %v4221_v23 }
 0x3b8   :  { %v1044_v26 = vpack.c.bf16 %v1043_v33, %v1043_v33  ;;  %v4189_v33 = vunpack.c.h.bf16 %v3365_v2 }
 0x3ba   :  { %1046 = vst.msk [vmem:[%s3846_s7] sm:$0xf] %vm1045_vm10, %v1044_v26 }
 0x3c9   :  { %v1226_v41 = vpop.f32.mrf.mxu1 }
 0x3ca   :  { %v1238_v47 = vadd.f32 %v1226_v41, %v1187_v30 }
 0x3cc   :  { %v1288_v22 = vadd.f32 %v1276_v25, %v1238_v47  ;;  %v4193_v25 = vunpack.c.h.bf16 %v3409_v35  ;;  %v4195_v35 = vld [vmem:[#allocation9_spill] sm:$0xff] }
 0x3ce   :  { %v1292_v20 = vmax.f32 %v1288_v22, 0.0 }
 0x3d0   :  { %1887 = vmatmul.msk.f32.vlgmr.msrb.gmra.mxu2 %vm623_vm5, %v1292_v20  ;;  %1891 = vmatmul.msk.f32.vlgmr.msrb.gmra.mxu0 %vm623_vm5, %v1292_v20 }
 0x3d1   :  { %v1229_v45 = vpop.f32.mrf.mxu1  ;;  %1571 = vmatpush.msrb.mxu2 %v4177_v7  ;;  %1621 = vmatpush.msrb.mxu0 %v2237_v11  ;;  %v4181_v11 = vunpack.c.l.bf16 %v4179_v56  ;;  %v4199_v7 = vld [vmem:[#allocation11_spill] sm:$0xff] }
 0x3d2   :  { %v1239_v28 = vadd.f32 %v1229_v45, %v1188_v21  ;;  %v4196_v21 = vunpack.c.l.bf16 %v4195_v35  ;;  %v4197_v45 = vld [vmem:[#allocation7_spill] sm:$0xff] }
 0x3d3   :  { %1572 = vmatpush.msrb.mxu2 %v4178_v1  ;;  %1622 = vmatpush.msrb.mxu0 %v2236_v13  ;;  %v4198_v52 = vunpack.c.l.bf16 %v4197_v45  ;;  %v4202_v1 = vunpack.c.l.bf16 %v4199_v7 }
 0x3d4   :  { %v1289_v42 = vadd.f32 %v1279_v44, %v1239_v28  ;;  %v4200_v28 = vunpack.c.h.bf16 %v4199_v7 }
 0x3d5   :  { %1573 = vmatpush.msrb.mxu2 %v4180_v40  ;;  %1623 = vmatpush.msrb.mxu0 %v2233_v24  ;;  %v4206_v40 = vunpack.c.h.bf16 %v3294_v5 }
 0x3d6   :  { %v1293_v61 = vmax.f32 %v1289_v42, 0.0  ;;  %v4204_v42 = vld [vmem:[#allocation12_spill] sm:$0xff] }
 0x3d7   :  { %1574 = vmatpush.msrb.mxu2 %v4181_v11  ;;  %1624 = vmatpush.msrb.mxu0 %v2232_v27  ;;  %v4205_v56 = vunpack.c.h.bf16 %v4204_v42  ;;  %v4209_v11 = vunpack.c.h.bf16 %v4195_v35 }
 0x3d8   :  { %1888 = vmatmul.msk.f32.gmra.mxu2 %vm623_vm5, %v1293_v61  ;;  %1892 = vmatmul.msk.f32.gmra.mxu0 %vm623_vm5, %v1293_v61  ;;  %v4207_v61 = vunpack.c.l.bf16 %v4204_v42 }
 0x3d9   :  { %v1232_v13 = vpop.f32.mrf.mxu1  ;;  %1575 = vmatpush.msrb.mxu2 %v4183_v15  ;;  %1625 = vmatpush.msrb.mxu0 %v2229_v50  ;;  %v4188_v50 = vunpack.c.l.bf16 %v3343_v63  ;;  %v4216_v15 = vld [vmem:[#allocation16_spill] sm:$0xff] }
 0x3da   :  { %v1240_v24 = vadd.f32 %v1232_v13, %v1189_v38  ;;  %v4210_v38 = vunpack.c.h.bf16 %v4197_v45  ;;  %v4213_v13 = vunpack.c.h.bf16 %v3316_v18  ;;  %v4219_v53 = vunpack.c.l.bf16 %v4216_v15 }
 0x3db   :  { %1576 = vmatpush.msrb.mxu2 %v4184_v31  ;;  %1626 = vmatpush.msrb.mxu0 %v2228_v49  ;;  %v1285_v49 = vpop.f32.mrf.mxu3  ;;  %v4218_v31 = vunpack.c.h.bf16 %v3338_v43 }
 0x3dc   :  { %v1290_v27 = vadd.f32 %v1282_v32, %v1240_v24  ;;  %v4208_v32 = vunpack.c.l.bf16 %v3294_v5  ;;  %v4215_v5 = vunpack.c.l.bf16 %v3316_v18  ;;  %v4217_v24 = vunpack.c.h.bf16 %v4216_v15  ;;  %v4225_v18 = vld [vmem:[#allocation18_spill] sm:$0xff] }
 0x3dd   :  { %1577 = vmatpush.msrb.mxu2 %v4186_v3  ;;  %1627 = vmatpush.msrb.mxu0 %v2225_v37  ;;  %v4190_v37 = vunpack.c.l.bf16 %v3365_v2  ;;  %v4223_v3 = vld [vmem:[#allocation8_spill] sm:$0xff] }
 0x3de   :  { %v1294_v62 = vmax.f32 %v1290_v27, 0.0  ;;  %v4220_v27 = vunpack.c.l.bf16 %v3338_v43  ;;  %v4229_v43 = vunpack.c.l.bf16 %v3360_v48 }
 0x3df   :  { %1578 = vmatpush.msrb.mxu2 %v4187_v0  ;;  %1628 = vmatpush.msrb.mxu0 %v4188_v50  ;;  %v4226_v0 = vunpack.c.h.bf16 %v4225_v18  ;;  %v4227_v50 = vunpack.c.h.bf16 %v3360_v48 }
 0x3e0   :  { %1889 = vmatmul.msk.f32.gmra.mxu2 %vm623_vm5, %v1294_v62  ;;  %1893 = vmatmul.msk.f32.gmra.mxu0 %vm623_vm5, %v1294_v62  ;;  %v4224_v62 = vunpack.c.l.bf16 %v4223_v3 }
 0x3e1   :  { %v1235_v10 = vpop.f32.mrf.mxu1  ;;  %1629 = vmatpush.msrb.mxu0 %v4189_v33  ;;  %v4232_v33 = vunpack.c.h.bf16 %v3382_v58 }
 0x3e2   :  { %v1241_v9 = vadd.f32 %v1235_v10, %v1190_v4  ;;  %v4228_v4 = vunpack.c.l.bf16 %v4225_v18  ;;  %v4230_v10 = vld [vmem:[#allocation20_spill] sm:$0xff] }
 0x3e3   :  { %1630 = vmatpush.msrb.mxu0 %v4190_v37  ;;  %v4234_v37 = vunpack.c.l.bf16 %v3382_v58 }
 0x3e4   :  { %v1291_v26 = vadd.f32 %v1285_v49, %v1241_v9  ;;  %v4231_v49 = vunpack.c.h.bf16 %v4230_v10  ;;  %v4233_v9 = vunpack.c.l.bf16 %v4230_v10 }
 0x3e5   :  { %1631 = vmatpush.msrb.mxu0 %v4191_v36 }
 0x3e6   :  { %v1295_v63 = vmax.f32 %v1291_v26, 0.0  ;;  %v4235_v26 = vld [vmem:[#allocation21_spill] sm:$0xff] }
 0x3e7   :  { %1632 = vmatpush.msrb.mxu0 %v4192_v39  ;;  %v4236_v36 = vunpack.c.h.bf16 %v4235_v26  ;;  %v4238_v48 = vunpack.c.l.bf16 %v4235_v26  ;;  %v4239_v39 = vunpack.c.l.bf16 %v3404_v16 }
 0x3e8   :  { %1890 = vmatmul.msk.f32.gmra.mxu2 %vm623_vm5, %v1295_v63  ;;  %1894 = vmatmul.msk.f32.gmra.mxu0 %vm623_vm5, %v1295_v63  ;;  %v4237_v63 = vunpack.c.h.bf16 %v3404_v16 }
 0x3e9   :  { %1633 = vmatpush.msrb.mxu0 %v4193_v25  ;;  %v4240_v25 = vld [vmem:[#allocation22_spill] sm:$0xff] }
 0x3eb   :  { %1634 = vmatpush.msrb.mxu0 %v4194_v60  ;;  %v4241_v60 = vunpack.c.h.bf16 %v4240_v25 }
 0x44d   :  { %v1354_v2 = vpop.f32.mrf.mxu0 }
 0x453   :  { %v1325_v55 = vpop.f32.mrf.mxu2 }
 0x454   :  { %v1366_v19 = vmax.f32 %v1325_v55, %v1354_v2  ;;  %v4242_v2 = vunpack.c.l.bf16 %v4240_v25 }
 0x455   :  { %v1357_v30 = vpop.f32.mrf.mxu0 }
 0x45b   :  { %v1328_v12 = vpop.f32.mrf.mxu2 }
 0x45c   :  { %v1367_v20 = vmax.f32 %v1328_v12, %v1357_v30 }
 0x45d   :  { %v1360_v41 = vpop.f32.mrf.mxu0 }
 0x463   :  { %v1331_v47 = vpop.f32.mrf.mxu2 }
 0x464   :  { %v1368_v44 = vmax.f32 %v1331_v47, %v1360_v41 }
 0x465   :  { %v1363_v57 = vpop.f32.mrf.mxu0 }
 0x46b   :  { %v1334_v22 = vpop.f32.mrf.mxu2 }
 0x46c   :  { %v1369_v34 = vmax.f32 %v1334_v22, %v1363_v57 }
 0x46e   :  { %1895 = vmatpush.msk.msrb.mxu1 %vm467_vm1, %v1369_v34  ;;  %1899 = vmatpush.msk.msra.mxu3 %vm467_vm1, %v1369_v34 }
 0x470   :  { %1386 = vmatpush.msrb.mxu1 %v1368_v44  ;;  %1412 = vmatpush.msra.mxu3 %v1368_v44 }
 0x472   :  { %1387 = vmatpush.msrb.mxu1 %v1367_v20  ;;  %1413 = vmatpush.msra.mxu3 %v1367_v20 }
 0x474   :  { %1388 = vmatpush.msrb.mxu1 %v1366_v19  ;;  %1414 = vmatpush.msra.mxu3 %v1366_v19 }
 0x475   :  { %1900 = vmatmul.msk.f32.vlgmr.msra.gmra.mxu3 %vm698_vm6, %v4196_v21  ;;  %1896 = vmatmul.msk.f32.vlgmr.msrb.gmra.mxu1 %vm698_vm6, %v4198_v52 }
 0x476   :  { %1445 = vmatpush.msra.mxu1 %v4200_v28  ;;  %1598 = vmatpush.msrb.mxu3 %v4201_v29 }
 0x478   :  { %1446 = vmatpush.msra.mxu1 %v4202_v1  ;;  %1599 = vmatpush.msrb.mxu3 %v4203_v17 }
 0x47a   :  { %1447 = vmatpush.msra.mxu1 %v4205_v56  ;;  %1600 = vmatpush.msrb.mxu3 %v4206_v40 }
 0x47c   :  { %1448 = vmatpush.msra.mxu1 %v4207_v61  ;;  %1601 = vmatpush.msrb.mxu3 %v4208_v32 }
 0x47d   :  { %1901 = vmatmul.msk.f32.gmra.mxu3 %vm698_vm6, %v4209_v11  ;;  %1897 = vmatmul.msk.f32.gmra.mxu1 %vm698_vm6, %v4210_v38 }
 0x47e   :  { %1449 = vmatpush.msra.mxu1 %v4212_v14  ;;  %1602 = vmatpush.msrb.mxu3 %v4213_v13 }
 0x480   :  { %1450 = vmatpush.msra.mxu1 %v4214_v54  ;;  %1603 = vmatpush.msrb.mxu3 %v4215_v5 }
 0x482   :  { %1451 = vmatpush.msra.mxu1 %v4217_v24  ;;  %1604 = vmatpush.msrb.mxu3 %v4218_v31 }
 0x484   :  { %1452 = vmatpush.msra.mxu1 %v4219_v53  ;;  %1605 = vmatpush.msrb.mxu3 %v4220_v27 }
 0x485   :  { %1902 = vmatmul.msk.f32.gmra.mxu3 %vm698_vm6, %v4222_v59  ;;  %1898 = vmatmul.msk.f32.gmra.mxu1 %vm698_vm6, %v4224_v62 }
 0x486   :  { %1537 = vmatpush.msrb.mxu1 %v4226_v0  ;;  %1606 = vmatpush.msrb.mxu3 %v4227_v50 }
 0x488   :  { %1538 = vmatpush.msrb.mxu1 %v4228_v4  ;;  %1607 = vmatpush.msrb.mxu3 %v4229_v43 }
 0x48a   :  { %1539 = vmatpush.msrb.mxu1 %v4231_v49  ;;  %1608 = vmatpush.msrb.mxu3 %v4232_v33 }
 0x48c   :  { %1540 = vmatpush.msrb.mxu1 %v4233_v9  ;;  %1609 = vmatpush.msrb.mxu3 %v4234_v37 }
 0x48e   :  { %1541 = vmatpush.msrb.mxu1 %v4236_v36  ;;  %1610 = vmatpush.msrb.mxu3 %v4237_v63 }
 0x490   :  { %1542 = vmatpush.msrb.mxu1 %v4238_v48  ;;  %1611 = vmatpush.msrb.mxu3 %v4239_v39 }
 0x492   :  { %1543 = vmatpush.msrb.mxu1 %v4241_v60 }
 0x494   :  { %1544 = vmatpush.msrb.mxu1 %v4242_v2 }
 0x4f2   :  { %v1390_v58 = vpop.f32.mrf.mxu1 }
 0x4f8   :  { %v1416_v55 = vpop.f32.mrf.mxu3 }
 0x4f9   :  { %v1425_v30 = vmax.f32 %v1390_v58, %v1416_v55 }
 0x4fa   :  { %v1393_v12 = vpop.f32.mrf.mxu1 }
 0x4fb   :  { %1905 = vmatmul.msk.f32.vlgmr.msra.gmra.mxu2 %vm780_vm7, %v1425_v30  ;;  %v1430_v57 = vrot.slane %v1425_v30, 1  ;;  %v1487_v16 = vrot.slane %v1425_v30, 2  ;;  %v1554_v21 = vrot.slane %v1425_v30, 4  ;;  %v1520_v17 = vrot.slane %v1425_v30, 3 }
 0x500   :  { %v1419_v41 = vpop.f32.mrf.mxu3 }
 0x501   :  { %v1426_v47 = vmax.f32 %v1393_v12, %v1419_v41 }
 0x502   :  { %v1396_v35 = vpop.f32.mrf.mxu1 }
 0x503   :  { %1906 = vmatmul.msk.f32.gmra.mxu2 %vm780_vm7, %v1426_v47  ;;  %v1431_v22 = vrot.slane %v1426_v47, 1  ;;  %v1488_v34 = vrot.slane %v1426_v47, 2  ;;  %v1555_v19 = vrot.slane %v1426_v47, 4  ;;  %v1521_v29 = vrot.slane %v1426_v47, 3 }
 0x505   :  { %v1432_v44 = vsel %vm384_vm0, %v1430_v57, %v1431_v22  ;;  %v1489_v20 = vsel %vm467_vm1, %v1487_v16, %v1488_v34  ;;  %v1556_v52 = vsel %vm568_vm4, %v1554_v21, %v1555_v19  ;;  %v1522_v42 = vsel %vm517_vm3, %v1520_v17, %v1521_v29 }
 0x506   :  { %1903 = vmatmul.msk.f32.vlgmr.msra.gmra.mxu1 %vm780_vm7, %v1432_v44  ;;  %1907 = vmatmul.msk.f32.vlgmr.msra.gmra.mxu0 %vm780_vm7, %v1489_v20 }
 0x508   :  { %v1422_v45 = vpop.f32.mrf.mxu3 }
 0x509   :  { %v1427_v7 = vmax.f32 %v1396_v35, %v1422_v45 }
 0x50b   :  { %1911 = vmatmul.msk.f32.vlgmr.msrb.gmra.mxu2 %vm780_vm7, %v1556_v52  ;;  %v1557_v28 = vrot.slane %v1427_v7, 4  ;;  %v1523_v56 = vrot.slane %v1427_v7, 3 }
 0x50d   :  { %v1558_v1 = vsel %vm568_vm4, %v1555_v19, %v1557_v28  ;;  %v1524_v40 = vsel %vm517_vm3, %v1521_v29, %v1523_v56 }
 0x50e   :  { %1904 = vmatmul.msk.f32.gmra.mxu1 %vm780_vm7, %v1431_v22  ;;  %1908 = vmatmul.msk.f32.gmra.mxu0 %vm780_vm7, %v1488_v34 }
 0x513   :  { %1912 = vmatmul.msk.f32.gmra.mxu2 %vm780_vm7, %v1558_v1 }
 0x516   :  { %1909 = vmatmul.msk.f32.vlgmr.msrb.gmra.mxu1 %vm780_vm7, %v1522_v42 }
 0x51e   :  { %1910 = vmatmul.msk.f32.gmra.mxu1 %vm780_vm7, %v1524_v40 }
 0x57e   :  { %v1481_v61 = vpop.f32.mrf.mxu2 }
 0x583   :  { %v1454_v32 = vpop.f32.mrf.mxu1  ;;  %v1511_v14 = vpop.f32.mrf.mxu0 }
 0x584   :  { %v1482_v6 = vadd.f32 %v1481_v61, %v1454_v32 }
 0x586   :  { %v1484_v11 = vpop.f32.mrf.mxu2  ;;  %v1517_v13 = vadd.f32 %v1511_v14, %v1482_v6 }
 0x58b   :  { %v1457_v38 = vpop.f32.mrf.mxu1  ;;  %v1514_v27 = vpop.f32.mrf.mxu0 }
 0x58c   :  { %v1485_v24 = vadd.f32 %v1484_v11, %v1457_v38 }
 0x58e   :  { %v1580_v54 = vpop.f32.mrf.mxu2  ;;  %v1518_v23 = vadd.f32 %v1514_v27, %v1485_v24 }
 0x593   :  { %v1546_v5 = vpop.f32.mrf.mxu1 }
 0x594   :  { %v1552_v15 = vadd.f32 %v1546_v5, %v1517_v13 }
 0x596   :  { %v1586_v31 = vadd.f32 %v1580_v54, %v1552_v15  ;;  %v1583_v62 = vpop.f32.mrf.mxu2 }
 0x598   :  { %v1588_v53 = vmax.f32 %v1586_v31, 0.0 }
 0x59a   :  { %1913 = vmatmul.msk.f32.vlgmr.msrb.gmra.mxu3 %vm938_vm8, %v1588_v53  ;;  %1915 = vmatmul.msk.f32.vlgmr.msrb.gmra.mxu0 %vm938_vm8, %v1588_v53 }
 0x59b   :  { %v1549_v59 = vpop.f32.mrf.mxu1 }
 0x59c   :  { %v1553_v3 = vadd.f32 %v1549_v59, %v1518_v23 }
 0x59e   :  { %v1587_v18 = vadd.f32 %v1583_v62, %v1553_v3 }
 0x5a0   :  { %v1589_v0 = vmax.f32 %v1587_v18, 0.0 }
 0x5a2   :  { %1914 = vmatmul.msk.f32.gmra.mxu3 %vm938_vm8, %v1589_v0  ;;  %1916 = vmatmul.msk.f32.gmra.mxu0 %vm938_vm8, %v1589_v0 }
 0x617   :  { %v1636_v50 = vpop.f32.mrf.mxu0 }
 0x61d   :  { %v1613_v4 = vpop.f32.mrf.mxu3 }
 0x61e   :  { %v1642_v33 = vmax.f32 %v1613_v4, %v1636_v50 }
 0x61f   :  { %v1639_v43 = vpop.f32.mrf.mxu0 }
 0x625   :  { %v1616_v10 = vpop.f32.mrf.mxu3 }
 0x626   :  { %v1643_v49 = vmax.f32 %v1616_v10, %v1639_v43 }
 0x628   :  { %1917 = vmatpush.msk.msra.mxu0 %vm467_vm1, %v1643_v49  ;;  %1919 = vmatpush.msk.msra.mxu2 %vm467_vm1, %v1643_v49 }
 0x62a   :  { %1662 = vmatpush.msra.mxu0 %v1642_v33  ;;  %1682 = vmatpush.msra.mxu2 %v1642_v33 }
 0x62b   :  { %1920 = vmatmul.msk.f32.vlgmr.msra.gmra.mxu2 %vm993_vm9, %v2241_v46  ;;  %1918 = vmatmul.msk.f32.vlgmr.msra.gmra.mxu0 %vm993_vm9, %v2240_v8 }
 0x6a8   :  { %v1664_v9 = vpop.f32.mrf.mxu0 }
 0x6ae   :  { %v1684_v37 = vpop.f32.mrf.mxu2 }
 0x6af   :  { %v1687_v26 = vmax.f32 %v1664_v9, %v1684_v37 }
 0x6b1   :  { %v1688_v36 = vpack.c.bf16 %v1687_v26, %v1687_v26 }
 0x6b3   :  { %1921 = vst.msk [vmem:[%s3846_s7 + $0x4] sm:$0xf] %vm1045_vm10, %v1688_v36 }

</bundles_post_ra>
